<compile_context>
chip_gen: v5e
topology: v5e:2x2
jax: 0.10.0
libtpu: 0.0.40
codegen_flags: <defaults>
</compile_context>

<pallas_src>
import functools

import numpy as np
import jax
import jax.numpy as jnp
from jax import lax
from jax.experimental import pallas as pl
from jax.experimental.pallas import tpu as pltpu

# Module hyper-parameters (match the PyTorch defaults).
VAR_W = 1.0
INV_W = 1.0
COV_W = 1.0
VAR_THR = 1.0
EPS = 1e-5

LANE = 128          # lane width: feature axis is padded to a multiple of this
SUB = 8             # sublane quantum: row tiles are multiples of this
NC = 2              # parallel grid slices (v7x megacore); harmless on 1-TC chips
TM_MAX = 512        # max rows per tile: 2 bufs * 2 inputs * 512*1024*4B + Dp^2*4B << 48 MiB
VMEM_LIMIT = 48 * 1024 * 1024   # explicit budget; fits v7x's 64 MiB physical VMEM

# MXU input dtype for the Gram matmul.  jnp.bfloat16 gives ~3-4x MXU throughput on
# v6e/v7x (f32 accumulation keeps the result within ~1e-3); kept at f32 by default so
# the forward matches the PyTorch module bit-for-bit at the usual f32 tolerance.
GRAM_DTYPE = jnp.float32


def _cdiv(a, b):
    return -(-a // b)


def _round_up(a, b):
    return _cdiv(a, b) * b


def _row_tiles(n_rows):
    """Static tiling: (rows per tile, tiles per parallel slice, padded row count)."""
    tm = min(TM_MAX, _round_up(max(_cdiv(n_rows, NC), 1), SUB))
    nt = _cdiv(n_rows, NC * tm)
    return tm, nt, NC * nt * tm


# ----------------------------------------------------------------------------------
# Kernel 1: masked accumulation of Gram / column moments over row tiles of x and y.
# Grid = (NC parallel slices, NT reduction tiles).  Outputs are per-slice partials.
# ----------------------------------------------------------------------------------
def _varcov_acc_kernel(x_ref, y_ref, mx_ref, my_ref, gram_ref, mom_ref):
    t = pl.program_id(1)

    @pl.when(t == 0)
    def _():
        gram_ref[...] = jnp.zeros_like(gram_ref)
        mom_ref[...] = jnp.zeros_like(mom_ref)

    # (TM, Dp) * (TM, 1): row mask broadcast over lanes (no (TM, Dp) iota needed).
    zx = x_ref[...] * mx_ref[...]
    zy = y_ref[...] * my_ref[...]

    # Column moments (exact f32): row 0 = sum_i z_i, row 1 = sum_i z_i^2.
    csum = jnp.sum(zx, axis=0, keepdims=True) + jnp.sum(zy, axis=0, keepdims=True)
    csq = jnp.sum(zx * zx, axis=0, keepdims=True) + jnp.sum(zy * zy, axis=0, keepdims=True)
    mom_ref[0:1, :] += csum
    mom_ref[1:2, :] += csq

    # Gram update on the MXU: contract the row axis -> (Dp, Dp), f32 accumulation.
    gx = zx.astype(GRAM_DTYPE)
    gy = zy.astype(GRAM_DTYPE)
    gram_ref[...] += (
        lax.dot_general(gx, gx, (((0,), (0,)), ((), ())),
                        preferred_element_type=jnp.float32)
        + lax.dot_general(gy, gy, (((0,), (0,)), ((), ())),
                          preferred_element_type=jnp.float32))


# ----------------------------------------------------------------------------------
# Kernel 2: invariance partials: per-column sum of (inv_x - inv_y)^2 over row tiles.
# Pad rows are exact zeros in both compacted buffers, so no validity mask is needed.
# ----------------------------------------------------------------------------------
def _inv_acc_kernel(xc_ref, yc_ref, out_ref):
    t = pl.program_id(1)

    @pl.when(t == 0)
    def _():
        out_ref[...] = jnp.zeros_like(out_ref)

    d = xc_ref[...] - yc_ref[...]
    out_ref[0:1, :] += jnp.sum(d * d, axis=0, keepdims=True)


# ----------------------------------------------------------------------------------
# Kernel 3: epilogue - combine the NC per-core partials and emit the 4 scalars.
# ----------------------------------------------------------------------------------
def _finalize_kernel(cnt_ref, gram_ref, mom_ref, invp_ref, out_ref, *, d_true):
    dp = gram_ref.shape[1]
    kf = cnt_ref[0]          # number of paired (shift-mask) rows K
    mf = cnt_ref[1]          # number of image rows M = |image_x| + |image_y|
    df = jnp.float32(d_true)

    gram = gram_ref[0:dp, :]
    mom = mom_ref[0:SUB, :]
    invp = invp_ref[0:SUB, :]
    for c in range(1, NC):
        gram = gram + gram_ref[c * dp:(c + 1) * dp, :]
        mom = mom + mom_ref[c * SUB:(c + 1) * SUB, :]
        invp = invp + invp_ref[c * SUB:(c + 1) * SUB, :]

    # invariance = mean((inv_x - inv_y)^2) over K rows x d_true features.
    # (K == 0 or M <= 1 yields inf/nan, same as the PyTorch original.)
    inv_loss = jnp.sum(invp) / (kf * df)

    colsum = mom[0:1, :]
    colsq = mom[1:2, :]
    mean = colsum / mf                                        # (1, Dp); pad lanes are 0
    var = (colsq - mf * mean * mean) / (mf - 1.0)             # unbiased, matches torch.var
    std = jnp.sqrt(var + EPS)
    lane_ok = (lax.broadcasted_iota(jnp.int32, (1, dp), 1) < d_true).astype(jnp.float32)
    var_loss = jnp.sum(jnp.maximum(VAR_THR - std, 0.0) * lane_ok) / df

    # cov = (Z^T Z - M * mean^T mean) / (M - 1).  Build mean^T mean as an (8, Dp)
    # matmul with only row 0 populated (avoids a lane->sublane transpose / K=1 matmul).
    row0 = (lax.broadcasted_iota(jnp.int32, (SUB, dp), 0) == 0).astype(jnp.float32)
    mean_mat = mom * row0 * (1.0 / mf)                        # row 0 = mean, rest 0
    outer = lax.dot_general(mean_mat, mean_mat, (((0,), (0,)), ((), ())),
                            preferred_element_type=jnp.float32)
    cov = (gram - mf * outer) / (mf - 1.0)                    # pad rows/cols are exactly 0

    r = lax.broadcasted_iota(jnp.int32, (dp, dp), 0)
    c_ = lax.broadcasted_iota(jnp.int32, (dp, dp), 1)
    offdiag = (r != c_).astype(jnp.float32)
    cov_loss = jnp.sum(cov * cov * offdiag) / df

    loss = VAR_W * var_loss + INV_W * inv_loss + COV_W * cov_loss
    out_ref[0] = loss
    out_ref[1] = var_loss
    out_ref[2] = inv_loss
    out_ref[3] = cov_loss


# ----------------------------------------------------------------------------------
# pallas_call wrappers
# ----------------------------------------------------------------------------------
def _moment_call(x_v, y_v, mx, my, tm, nt, dp):
    row_map = lambda c, t: (c * nt + t, 0)
    return pl.pallas_call(
        _varcov_acc_kernel,
        grid=(NC, nt),
        in_specs=[
            pl.BlockSpec((tm, dp), row_map),
            pl.BlockSpec((tm, dp), row_map),
            pl.BlockSpec((tm, 1), row_map),
            pl.BlockSpec((tm, 1), row_map),
        ],
        out_specs=[
            pl.BlockSpec((dp, dp), lambda c, t: (c, 0)),
            pl.BlockSpec((SUB, dp), lambda c, t: (c, 0)),
        ],
        out_shape=[
            jax.ShapeDtypeStruct((NC * dp, dp), jnp.float32),
            jax.ShapeDtypeStruct((NC * SUB, dp), jnp.float32),
        ],
        compiler_params=pltpu.CompilerParams(
            dimension_semantics=("parallel", "arbitrary"),
            vmem_limit_bytes=VMEM_LIMIT),
    )(x_v, y_v, mx, my)


def _inv_call(xc, yc, tm, nt, dp):
    row_map = lambda c, t: (c * nt + t, 0)
    return pl.pallas_call(
        _inv_acc_kernel,
        grid=(NC, nt),
        in_specs=[
            pl.BlockSpec((tm, dp), row_map),
            pl.BlockSpec((tm, dp), row_map),
        ],
        out_specs=pl.BlockSpec((SUB, dp), lambda c, t: (c, 0)),
        out_shape=jax.ShapeDtypeStruct((NC * SUB, dp), jnp.float32),
        compiler_params=pltpu.CompilerParams(
            dimension_semantics=("parallel", "arbitrary"),
            vmem_limit_bytes=VMEM_LIMIT),
    )(xc, yc)


def _finalize_call(counts, gram_p, mom_p, inv_p, d_true):
    kern = functools.partial(_finalize_kernel, d_true=d_true)
    return pl.pallas_call(
        kern,
        in_specs=[
            pl.BlockSpec(memory_space=pltpu.MemorySpace.SMEM),
            pl.BlockSpec(gram_p.shape, lambda: (0, 0)),
            pl.BlockSpec(mom_p.shape, lambda: (0, 0)),
            pl.BlockSpec(inv_p.shape, lambda: (0, 0)),
        ],
        out_specs=pl.BlockSpec(memory_space=pltpu.MemorySpace.SMEM),
        out_shape=jax.ShapeDtypeStruct((4,), jnp.float32),
        compiler_params=pltpu.CompilerParams(vmem_limit_bytes=VMEM_LIMIT),
    )(counts, gram_p, mom_p, inv_p)


def _compact_rows(rows, mask, n_pad):
    """Order-preserving compaction of masked rows into a fixed zero-padded buffer."""
    dest = jnp.cumsum(mask.astype(jnp.int32)) - 1
    dest = jnp.where(mask, dest, n_pad)                # masked-out rows -> dropped
    buf = jnp.zeros((n_pad, rows.shape[1]), rows.dtype)
    return buf.at[dest].set(rows, mode="drop")


@jax.jit
def _vicreg_forward(x, y, image_masks1, image_masks2, shift_masks1, shift_masks2):
    B, T, D = x.shape
    N = B * T
    dp = _round_up(D, LANE)

    xf = jnp.pad(x.astype(jnp.float32).reshape(N, D), ((0, 0), (0, dp - D)))
    yf = jnp.pad(y.astype(jnp.float32).reshape(N, D), ((0, 0), (0, dp - D)))

    im1 = image_masks1.reshape(N) == 1
    im2 = image_masks2.reshape(N) == 1
    sm1 = shift_masks1.reshape(N) == 1
    sm2 = shift_masks2.reshape(N) == 1

    tm, nt, n_pad = _row_tiles(N)
    pad_r = n_pad - N

    # --- variance / covariance: masked accumulation over all rows (no compaction) ---
    x_v = jnp.pad(xf, ((0, pad_r), (0, 0)))
    y_v = jnp.pad(yf, ((0, pad_r), (0, 0)))
    mx = jnp.pad(im1.astype(jnp.float32), (0, pad_r)).reshape(n_pad, 1)
    my = jnp.pad(im2.astype(jnp.float32), (0, pad_r)).reshape(n_pad, 1)
    gram_p, mom_p = _moment_call(x_v, y_v, mx, my, tm, nt, dp)

    # --- invariance: pair i-th selected row of x with i-th selected row of y ---------
    xc = _compact_rows(xf, sm1, n_pad)
    yc = _compact_rows(yf, sm2, n_pad)
    inv_p = _inv_call(xc, yc, tm, nt, dp)

    kf = jnp.sum(sm1.astype(jnp.float32))
    mf = jnp.sum(im1.astype(jnp.float32)) + jnp.sum(im2.astype(jnp.float32))
    counts = jnp.stack([kf, mf])

    out = _finalize_call(counts, gram_p, mom_p, inv_p, D)
    return {
        "loss": out[0],
        "loss.variance": out[1],
        "loss.invariance": out[2],
        "loss.covariance": out[3],
    }


def vicreg_loss(x, y, image_masks1, image_masks2, shift_masks1, shift_masks2):
    return _vicreg_forward(x, y, image_masks1, image_masks2, shift_masks1, shift_masks2)


# ----------------------------------------------------------------------------------
# Pure numpy replica of the PyTorch forward for verification.
# ----------------------------------------------------------------------------------
def _reference(x, y, im1, im2, sm1, sm2):
    xn = np.asarray(x, dtype=np.float64)
    yn = np.asarray(y, dtype=np.float64)
    inv_x = xn.reshape(-1, xn.shape[-1])[np.asarray(sm1).reshape(-1) == 1]
    inv_y = yn.reshape(-1, yn.shape[-1])[np.asarray(sm2).reshape(-1) == 1]
    invariance = np.mean((inv_x - inv_y) ** 2)
    z = np.concatenate(
        [xn.reshape(-1, xn.shape[-1])[np.asarray(im1).reshape(-1) == 1],
         yn.reshape(-1, yn.shape[-1])[np.asarray(im2).reshape(-1) == 1]], axis=0)
    var = np.var(z, axis=0, ddof=1)
    variance = np.mean(np.maximum(VAR_THR - np.sqrt(var + EPS), 0.0))
    zc = z - z.mean(axis=0)
    cov = zc.T @ zc / (z.shape[0] - 1)
    off = cov - np.diag(np.diag(cov))
    covariance = np.sum(off ** 2) / z.shape[1]
    loss = VAR_W * variance + INV_W * invariance + COV_W * covariance
    return dict(loss=loss, variance=variance, invariance=invariance, covariance=covariance)


if __name__ == "__main__":
    B, T, D = 2, 8, 32
    key = jax.random.PRNGKey(0)
    kx, ky = jax.random.split(key)
    x = jax.random.normal(kx, (B, T, D), dtype=jnp.float32)
    y = jax.random.normal(ky, (B, T, D), dtype=jnp.float32)

    # Deterministic masks (same number of ones in the paired shift masks).
    shift_masks1 = np.zeros((B, T), dtype=np.int32)
    shift_masks1[:, 0:4] = 1
    shift_masks2 = np.zeros((B, T), dtype=np.int32)
    shift_masks2[:, 2:6] = 1
    image_masks1 = np.zeros((B, T), dtype=np.int32)
    image_masks1[:, ::2] = 1
    image_masks2 = np.zeros((B, T), dtype=np.int32)
    image_masks2[:, 1::2] = 1

    result = vicreg_loss(x, y, image_masks1, image_masks2, shift_masks1, shift_masks2)
    jax.block_until_ready(result["loss"])

    ref = _reference(x, y, image_masks1, image_masks2, shift_masks1, shift_masks2)
    np.testing.assert_allclose(float(result["loss"]), ref["loss"], rtol=1e-3, atol=1e-3)
    np.testing.assert_allclose(float(result["loss.variance"]), ref["variance"], rtol=1e-3, atol=1e-3)
    np.testing.assert_allclose(float(result["loss.invariance"]), ref["invariance"], rtol=1e-3, atol=1e-3)
    np.testing.assert_allclose(float(result["loss.covariance"]), ref["covariance"], rtol=1e-3, atol=1e-3)

    print("KERNEL_OK")
</pallas_src>

<mosaic_0001>
module attributes {stable_mosaic.version = 11 : i64} {
  func.func @_varcov_acc_kernel(%arg0: i32, %arg1: i32, %arg2: memref<8x128xf32, #tpu.memory_space<vmem>>, %arg3: memref<8x128xf32, #tpu.memory_space<vmem>>, %arg4: memref<8x1xf32, #tpu.memory_space<vmem>>, %arg5: memref<8x1xf32, #tpu.memory_space<vmem>>, %arg6: memref<128x128xf32, #tpu.memory_space<vmem>>, %arg7: memref<8x128xf32, #tpu.memory_space<vmem>>) attributes {dimension_semantics = [#tpu.dimension_semantics<parallel>, #tpu.dimension_semantics<arbitrary>], iteration_bounds = array<i64: 2, 1>, scalar_prefetch = 0 : i64, scratch_operands = 0 : i64, tpu.core_type = #tpu.core_type<tc>, window_params = [{transform_indices = @transform_0, window_bounds = array<i64: 8, 128>}, {transform_indices = @transform_1, window_bounds = array<i64: 8, 128>}, {transform_indices = @transform_2, window_bounds = array<i64: 8, 1>}, {transform_indices = @transform_3, window_bounds = array<i64: 8, 1>}, {transform_indices = @transform_4, window_bounds = array<i64: 128, 128>}, {transform_indices = @transform_5, window_bounds = array<i64: 8, 128>}]} {
    %c0_i32 = arith.constant 0 : i32
    %0 = arith.cmpi eq, %arg1, %c0_i32 : i32
    %1 = arith.extui %0 : i1 to i32
    %c0_i32_0 = arith.constant 0 : i32
    %2 = arith.cmpi ne, %1, %c0_i32_0 : i32
    scf.if %2 {
      %cst_24 = arith.constant 0.000000e+00 : f32
      %35 = vector.broadcast %cst_24 : f32 to vector<128x128xf32>
      %c0_25 = arith.constant 0 : index
      %c0_26 = arith.constant 0 : index
      %36 = vector.load %arg6[%c0_25, %c0_26] : memref<128x128xf32, #tpu.memory_space<vmem>>, vector<128x128xf32>
      tpu.vector_store %arg6[%c0_25, %c0_26], %35 {strides = array<i32>} : memref<128x128xf32, #tpu.memory_space<vmem>>, vector<128x128xf32>,
      %cst_27 = arith.constant 0.000000e+00 : f32
      %37 = vector.broadcast %cst_27 : f32 to vector<8x128xf32>
      %c0_28 = arith.constant 0 : index
      %c0_29 = arith.constant 0 : index
      %38 = vector.load %arg7[%c0_28, %c0_29] : memref<8x128xf32, #tpu.memory_space<vmem>>, vector<8x128xf32>
      tpu.vector_store %arg7[%c0_28, %c0_29], %37 {strides = array<i32>} : memref<8x128xf32, #tpu.memory_space<vmem>>, vector<8x128xf32>,
    } else {
    }
    %c0 = arith.constant 0 : index
    %c0_1 = arith.constant 0 : index
    %3 = vector.load %arg2[%c0, %c0_1] : memref<8x128xf32, #tpu.memory_space<vmem>>, vector<8x128xf32>
    %c0_2 = arith.constant 0 : index
    %c0_3 = arith.constant 0 : index
    %4 = vector.load %arg4[%c0_2, %c0_3] : memref<8x1xf32, #tpu.memory_space<vmem>>, vector<8x1xf32>
    %5 = vector.broadcast %4 : vector<8x1xf32> to vector<8x128xf32>
    %6 = arith.mulf %3, %5 : vector<8x128xf32>
    %c0_4 = arith.constant 0 : index
    %c0_5 = arith.constant 0 : index
    %7 = vector.load %arg3[%c0_4, %c0_5] : memref<8x128xf32, #tpu.memory_space<vmem>>, vector<8x128xf32>
    %c0_6 = arith.constant 0 : index
    %c0_7 = arith.constant 0 : index
    %8 = vector.load %arg5[%c0_6, %c0_7] : memref<8x1xf32, #tpu.memory_space<vmem>>, vector<8x1xf32>
    %9 = vector.broadcast %8 : vector<8x1xf32> to vector<8x128xf32>
    %10 = arith.mulf %7, %9 : vector<8x128xf32>
    %cst = arith.constant dense<0.000000e+00> : vector<128xf32>
    %11 = vector.multi_reduction <add>, %6, %cst [0] : vector<8x128xf32> to vector<128xf32>
    %12 = vector.shape_cast %11 : vector<128xf32> to vector<1x128xf32>
    %cst_8 = arith.constant dense<0.000000e+00> : vector<128xf32>
    %13 = vector.multi_reduction <add>, %10, %cst_8 [0] : vector<8x128xf32> to vector<128xf32>
    %14 = vector.shape_cast %13 : vector<128xf32> to vector<1x128xf32>
    %15 = arith.addf %12, %14 : vector<1x128xf32>
    %16 = arith.mulf %6, %6 : vector<8x128xf32>
    %cst_9 = arith.constant dense<0.000000e+00> : vector<128xf32>
    %17 = vector.multi_reduction <add>, %16, %cst_9 [0] : vector<8x128xf32> to vector<128xf32>
    %18 = vector.shape_cast %17 : vector<128xf32> to vector<1x128xf32>
    %19 = arith.mulf %10, %10 : vector<8x128xf32>
    %cst_10 = arith.constant dense<0.000000e+00> : vector<128xf32>
    %20 = vector.multi_reduction <add>, %19, %cst_10 [0] : vector<8x128xf32> to vector<128xf32>
    %21 = vector.shape_cast %20 : vector<128xf32> to vector<1x128xf32>
    %22 = arith.addf %18, %21 : vector<1x128xf32>
    %c0_11 = arith.constant 0 : index
    %c0_12 = arith.constant 0 : index
    %23 = vector.load %arg7[%c0_11, %c0_12] : memref<8x128xf32, #tpu.memory_space<vmem>>, vector<1x128xf32>
    %24 = arith.addf %23, %15 : vector<1x128xf32>
    %c0_13 = arith.constant 0 : index
    %c0_14 = arith.constant 0 : index
    %25 = vector.load %arg7[%c0_13, %c0_14] : memref<8x128xf32, #tpu.memory_space<vmem>>, vector<1x128xf32>
    tpu.vector_store %arg7[%c0_13, %c0_14], %24 {strides = array<i32>} : memref<8x128xf32, #tpu.memory_space<vmem>>, vector<1x128xf32>,
    %c1 = arith.constant 1 : index
    %c0_15 = arith.constant 0 : index
    %26 = vector.load %arg7[%c1, %c0_15] : memref<8x128xf32, #tpu.memory_space<vmem>>, vector<1x128xf32>
    %27 = arith.addf %26, %22 : vector<1x128xf32>
    %c1_16 = arith.constant 1 : index
    %c0_17 = arith.constant 0 : index
    %28 = vector.load %arg7[%c1_16, %c0_17] : memref<8x128xf32, #tpu.memory_space<vmem>>, vector<1x128xf32>
    tpu.vector_store %arg7[%c1_16, %c0_17], %27 {strides = array<i32>} : memref<8x128xf32, #tpu.memory_space<vmem>>, vector<1x128xf32>,
    %c0_18 = arith.constant 0 : index
    %c0_19 = arith.constant 0 : index
    %29 = vector.load %arg6[%c0_18, %c0_19] : memref<128x128xf32, #tpu.memory_space<vmem>>, vector<128x128xf32>
    %cst_20 = arith.constant dense<0.000000e+00> : vector<128x128xf32>
    %30 = tpu.matmul %6, %6, %cst_20 {dimension_numbers = #tpu.dot_dimension_numbers<[0], [0], [1], [1], [0, 1, 1, 1], [], []>} : vector<8x128xf32>, vector<8x128xf32>, vector<128x128xf32> -> vector<128x128xf32>
    %cst_21 = arith.constant dense<0.000000e+00> : vector<128x128xf32>
    %31 = tpu.matmul %10, %10, %cst_21 {dimension_numbers = #tpu.dot_dimension_numbers<[0], [0], [1], [1], [0, 1, 1, 1], [], []>} : vector<8x128xf32>, vector<8x128xf32>, vector<128x128xf32> -> vector<128x128xf32>
    %32 = arith.addf %30, %31 : vector<128x128xf32>
    %33 = arith.addf %29, %32 : vector<128x128xf32>
    %c0_22 = arith.constant 0 : index
    %c0_23 = arith.constant 0 : index
    %34 = vector.load %arg6[%c0_22, %c0_23] : memref<128x128xf32, #tpu.memory_space<vmem>>, vector<128x128xf32>
    tpu.vector_store %arg6[%c0_22, %c0_23], %33 {strides = array<i32>} : memref<128x128xf32, #tpu.memory_space<vmem>>, vector<128x128xf32>,
    return
  }
  func.func @transform_0(%arg0: i32, %arg1: i32) -> (i32, i32) {
    %c1_i32 = arith.constant 1 : i32
    %0 = arith.muli %arg0, %c1_i32 : i32
    %1 = arith.addi %0, %arg1 : i32
    %c0_i32 = arith.constant 0 : i32
    %c0_i32_0 = arith.constant 0 : i32
    return %1, %c0_i32 : i32, i32
  }
  func.func @transform_1(%arg0: i32, %arg1: i32) -> (i32, i32) {
    %c1_i32 = arith.constant 1 : i32
    %0 = arith.muli %arg0, %c1_i32 : i32
    %1 = arith.addi %0, %arg1 : i32
    %c0_i32 = arith.constant 0 : i32
    %c0_i32_0 = arith.constant 0 : i32
    return %1, %c0_i32 : i32, i32
  }
  func.func @transform_2(%arg0: i32, %arg1: i32) -> (i32, i32) {
    %c1_i32 = arith.constant 1 : i32
    %0 = arith.muli %arg0, %c1_i32 : i32
    %1 = arith.addi %0, %arg1 : i32
    %c0_i32 = arith.constant 0 : i32
    %c0_i32_0 = arith.constant 0 : i32
    return %1, %c0_i32 : i32, i32
  }
  func.func @transform_3(%arg0: i32, %arg1: i32) -> (i32, i32) {
    %c1_i32 = arith.constant 1 : i32
    %0 = arith.muli %arg0, %c1_i32 : i32
    %1 = arith.addi %0, %arg1 : i32
    %c0_i32 = arith.constant 0 : i32
    %c0_i32_0 = arith.constant 0 : i32
    return %1, %c0_i32 : i32, i32
  }
  func.func @transform_4(%arg0: i32, %arg1: i32) -> (i32, i32) {
    %c0_i32 = arith.constant 0 : i32
    %c0_i32_0 = arith.constant 0 : i32
    return %arg0, %c0_i32 : i32, i32
  }
  func.func @transform_5(%arg0: i32, %arg1: i32) -> (i32, i32) {
    %c0_i32 = arith.constant 0 : i32
    %c0_i32_0 = arith.constant 0 : i32
    return %arg0, %c0_i32 : i32, i32
  }
}

module attributes {stable_mosaic.version = 11 : i64} {
  func.func @_inv_acc_kernel(%arg0: i32, %arg1: i32, %arg2: memref<8x128xf32, #tpu.memory_space<vmem>>, %arg3: memref<8x128xf32, #tpu.memory_space<vmem>>, %arg4: memref<8x128xf32, #tpu.memory_space<vmem>>) attributes {dimension_semantics = [#tpu.dimension_semantics<parallel>, #tpu.dimension_semantics<arbitrary>], iteration_bounds = array<i64: 2, 1>, scalar_prefetch = 0 : i64, scratch_operands = 0 : i64, tpu.core_type = #tpu.core_type<tc>, window_params = [{transform_indices = @transform_0, window_bounds = array<i64: 8, 128>}, {transform_indices = @transform_1, window_bounds = array<i64: 8, 128>}, {transform_indices = @transform_2, window_bounds = array<i64: 8, 128>}]} {
    %c0_i32 = arith.constant 0 : i32
    %0 = arith.cmpi eq, %arg1, %c0_i32 : i32
    %1 = arith.extui %0 : i1 to i32
    %c0_i32_0 = arith.constant 0 : i32
    %2 = arith.cmpi ne, %1, %c0_i32_0 : i32
    scf.if %2 {
      %cst_8 = arith.constant 0.000000e+00 : f32
      %12 = vector.broadcast %cst_8 : f32 to vector<8x128xf32>
      %c0_9 = arith.constant 0 : index
      %c0_10 = arith.constant 0 : index
      %13 = vector.load %arg4[%c0_9, %c0_10] : memref<8x128xf32, #tpu.memory_space<vmem>>, vector<8x128xf32>
      tpu.vector_store %arg4[%c0_9, %c0_10], %12 {strides = array<i32>} : memref<8x128xf32, #tpu.memory_space<vmem>>, vector<8x128xf32>,
    } else {
    }
    %c0 = arith.constant 0 : index
    %c0_1 = arith.constant 0 : index
    %3 = vector.load %arg2[%c0, %c0_1] : memref<8x128xf32, #tpu.memory_space<vmem>>, vector<8x128xf32>
    %c0_2 = arith.constant 0 : index
    %c0_3 = arith.constant 0 : index
    %4 = vector.load %arg3[%c0_2, %c0_3] : memref<8x128xf32, #tpu.memory_space<vmem>>, vector<8x128xf32>
    %5 = arith.subf %3, %4 : vector<8x128xf32>
    %c0_4 = arith.constant 0 : index
    %c0_5 = arith.constant 0 : index
    %6 = vector.load %arg4[%c0_4, %c0_5] : memref<8x128xf32, #tpu.memory_space<vmem>>, vector<1x128xf32>
    %7 = arith.mulf %5, %5 : vector<8x128xf32>
    %cst = arith.constant dense<0.000000e+00> : vector<128xf32>
    %8 = vector.multi_reduction <add>, %7, %cst [0] : vector<8x128xf32> to vector<128xf32>
    %9 = vector.shape_cast %8 : vector<128xf32> to vector<1x128xf32>
    %10 = arith.addf %6, %9 : vector<1x128xf32>
    %c0_6 = arith.constant 0 : index
    %c0_7 = arith.constant 0 : index
    %11 = vector.load %arg4[%c0_6, %c0_7] : memref<8x128xf32, #tpu.memory_space<vmem>>, vector<1x128xf32>
    tpu.vector_store %arg4[%c0_6, %c0_7], %10 {strides = array<i32>} : memref<8x128xf32, #tpu.memory_space<vmem>>, vector<1x128xf32>,
    return
  }
  func.func @transform_0(%arg0: i32, %arg1: i32) -> (i32, i32) {
    %c1_i32 = arith.constant 1 : i32
    %0 = arith.muli %arg0, %c1_i32 : i32
    %1 = arith.addi %0, %arg1 : i32
    %c0_i32 = arith.constant 0 : i32
    %c0_i32_0 = arith.constant 0 : i32
    return %1, %c0_i32 : i32, i32
  }
  func.func @transform_1(%arg0: i32, %arg1: i32) -> (i32, i32) {
    %c1_i32 = arith.constant 1 : i32
    %0 = arith.muli %arg0, %c1_i32 : i32
    %1 = arith.addi %0, %arg1 : i32
    %c0_i32 = arith.constant 0 : i32
    %c0_i32_0 = arith.constant 0 : i32
    return %1, %c0_i32 : i32, i32
  }
  func.func @transform_2(%arg0: i32, %arg1: i32) -> (i32, i32) {
    %c0_i32 = arith.constant 0 : i32
    %c0_i32_0 = arith.constant 0 : i32
    return %arg0, %c0_i32 : i32, i32
  }
}

module attributes {stable_mosaic.version = 11 : i64} {
  func.func @_finalize_kernel(%arg0: memref<2xf32, #tpu.memory_space<smem>>, %arg1: memref<256x128xf32, #tpu.memory_space<vmem>>, %arg2: memref<16x128xf32, #tpu.memory_space<vmem>>, %arg3: memref<16x128xf32, #tpu.memory_space<vmem>>, %arg4: memref<4xf32, #tpu.memory_space<smem>>) attributes {dimension_semantics = [], scalar_prefetch = 0 : i64, scratch_operands = 0 : i64, tpu.core_type = #tpu.core_type<tc>} {
    %c0 = arith.constant 0 : index
    %0 = memref.load %arg0[%c0] : memref<2xf32, #tpu.memory_space<smem>>
    %c1 = arith.constant 1 : index
    %1 = memref.load %arg0[%c1] : memref<2xf32, #tpu.memory_space<smem>>
    %c0_0 = arith.constant 0 : index
    %c0_1 = arith.constant 0 : index
    %2 = vector.load %arg1[%c0_0, %c0_1] : memref<256x128xf32, #tpu.memory_space<vmem>>, vector<128x128xf32>
    %c0_2 = arith.constant 0 : index
    %c0_3 = arith.constant 0 : index
    %3 = vector.load %arg2[%c0_2, %c0_3] : memref<16x128xf32, #tpu.memory_space<vmem>>, vector<8x128xf32>
    %c0_4 = arith.constant 0 : index
    %c0_5 = arith.constant 0 : index
    %4 = vector.load %arg3[%c0_4, %c0_5] : memref<16x128xf32, #tpu.memory_space<vmem>>, vector<8x128xf32>
    %c128 = arith.constant 128 : index
    %c0_6 = arith.constant 0 : index
    %5 = vector.load %arg1[%c128, %c0_6] : memref<256x128xf32, #tpu.memory_space<vmem>>, vector<128x128xf32>
    %6 = arith.addf %2, %5 : vector<128x128xf32>
    %c8 = arith.constant 8 : index
    %c0_7 = arith.constant 0 : index
    %7 = vector.load %arg2[%c8, %c0_7] : memref<16x128xf32, #tpu.memory_space<vmem>>, vector<8x128xf32>
    %8 = arith.addf %3, %7 : vector<8x128xf32>
    %c8_8 = arith.constant 8 : index
    %c0_9 = arith.constant 0 : index
    %9 = vector.load %arg3[%c8_8, %c0_9] : memref<16x128xf32, #tpu.memory_space<vmem>>, vector<8x128xf32>
    %10 = arith.addf %4, %9 : vector<8x128xf32>
    %11 = vector.shape_cast %10 : vector<8x128xf32> to vector<1x8x128xf32>
    %cst = arith.constant dense<0.000000e+00> : vector<1xf32>
    %12 = vector.multi_reduction <add>, %11, %cst [1, 2] : vector<1x8x128xf32> to vector<1xf32>
    %13 = vector.shape_cast %12 : vector<1xf32> to vector<1x1x1xf32>
    %14 = vector.extract %13[0, 0, 0] : f32 from vector<1x1x1xf32>
    %cst_10 = arith.constant 3.200000e+01 : f32
    %15 = arith.mulf %0, %cst_10 : f32
    %16 = arith.divf %14, %15 : f32
    %17 = vector.extract_strided_slice %8 {offsets = [0, 0], sizes = [1, 128], strides = [1, 1]} : vector<8x128xf32> to vector<1x128xf32>
    %18 = vector.extract_strided_slice %8 {offsets = [1, 0], sizes = [1, 128], strides = [1, 1]} : vector<8x128xf32> to vector<1x128xf32>
    %19 = vector.broadcast %1 : f32 to vector<1x128xf32>
    %20 = arith.divf %17, %19 : vector<1x128xf32>
    %21 = vector.broadcast %1 : f32 to vector<1x128xf32>
    %22 = arith.mulf %21, %20 : vector<1x128xf32>
    %23 = arith.mulf %22, %20 : vector<1x128xf32>
    %24 = arith.subf %18, %23 : vector<1x128xf32>
    %cst_11 = arith.constant 1.000000e+00 : f32
    %25 = arith.subf %1, %cst_11 : f32
    %26 = vector.broadcast %25 : f32 to vector<1x128xf32>
    %27 = arith.divf %24, %26 : vector<1x128xf32>
    %cst_12 = arith.constant 9.99999974E-6 : f32
    %28 = vector.broadcast %cst_12 : f32 to vector<1x128xf32>
    %29 = arith.addf %27, %28 : vector<1x128xf32>
    %30 = math.sqrt %29 : vector<1x128xf32>
    %31 = tpu.iota {dimensions = array<i32: 1>} : vector<1x128xi32>
    %c32_i32 = arith.constant 32 : i32
    %32 = vector.broadcast %c32_i32 : i32 to vector<1x128xi32>
    %33 = arith.cmpi slt, %31, %32 : vector<1x128xi32>
    %34 = arith.extui %33 : vector<1x128xi1> to vector<1x128xi32>
    %35 = arith.sitofp %34 : vector<1x128xi32> to vector<1x128xf32>
    %cst_13 = arith.constant 1.000000e+00 : f32
    %36 = vector.broadcast %cst_13 : f32 to vector<1x128xf32>
    %37 = arith.subf %36, %30 : vector<1x128xf32>
    %cst_14 = arith.constant 0.000000e+00 : f32
    %38 = vector.broadcast %cst_14 : f32 to vector<1x128xf32>
    %39 = arith.maximumf %37, %38 : vector<1x128xf32>
    %40 = arith.mulf %39, %35 : vector<1x128xf32>
    %41 = vector.shape_cast %40 : vector<1x128xf32> to vector<1x1x128xf32>
    %cst_15 = arith.constant dense<0.000000e+00> : vector<1xf32>
    %42 = vector.multi_reduction <add>, %41, %cst_15 [1, 2] : vector<1x1x128xf32> to vector<1xf32>
    %43 = vector.shape_cast %42 : vector<1xf32> to vector<1x1x1xf32>
    %44 = vector.extract %43[0, 0, 0] : f32 from vector<1x1x1xf32>
    %cst_16 = arith.constant 3.200000e+01 : f32
    %45 = arith.divf %44, %cst_16 : f32
    %46 = tpu.iota {dimensions = array<i32: 0>} : vector<8x128xi32>
    %c0_i32 = arith.constant 0 : i32
    %47 = vector.broadcast %c0_i32 : i32 to vector<8x128xi32>
    %48 = arith.cmpi eq, %46, %47 : vector<8x128xi32>
    %49 = arith.extui %48 : vector<8x128xi1> to vector<8x128xi32>
    %50 = arith.sitofp %49 : vector<8x128xi32> to vector<8x128xf32>
    %51 = arith.mulf %8, %50 : vector<8x128xf32>
    %cst_17 = arith.constant 1.000000e+00 : f32
    %52 = arith.divf %cst_17, %1 : f32
    %53 = vector.broadcast %52 : f32 to vector<8x128xf32>
    %54 = arith.mulf %51, %53 : vector<8x128xf32>
    %cst_18 = arith.constant dense<0.000000e+00> : vector<128x128xf32>
    %55 = tpu.matmul %54, %54, %cst_18 {dimension_numbers = #tpu.dot_dimension_numbers<[0], [0], [1], [1], [0, 1, 1, 1], [], []>} : vector<8x128xf32>, vector<8x128xf32>, vector<128x128xf32> -> vector<128x128xf32>
    %56 = vector.broadcast %1 : f32 to vector<128x128xf32>
    %57 = arith.mulf %56, %55 : vector<128x128xf32>
    %58 = arith.subf %6, %57 : vector<128x128xf32>
    %cst_19 = arith.constant 1.000000e+00 : f32
    %59 = arith.subf %1, %cst_19 : f32
    %60 = vector.broadcast %59 : f32 to vector<128x128xf32>
    %61 = arith.divf %58, %60 : vector<128x128xf32>
    %62 = tpu.iota {dimensions = array<i32: 0>} : vector<128x128xi32>
    %63 = tpu.iota {dimensions = array<i32: 1>} : vector<128x128xi32>
    %64 = arith.cmpi ne, %62, %63 : vector<128x128xi32>
    %65 = arith.extui %64 : vector<128x128xi1> to vector<128x128xi32>
    %66 = arith.sitofp %65 : vector<128x128xi32> to vector<128x128xf32>
    %67 = arith.mulf %61, %61 : vector<128x128xf32>
    %68 = arith.mulf %67, %66 : vector<128x128xf32>
    %69 = vector.shape_cast %68 : vector<128x128xf32> to vector<1x128x128xf32>
    %cst_20 = arith.constant dense<0.000000e+00> : vector<1xf32>
    %70 = vector.multi_reduction <add>, %69, %cst_20 [1, 2] : vector<1x128x128xf32> to vector<1xf32>
    %71 = vector.shape_cast %70 : vector<1xf32> to vector<1x1x1xf32>
    %72 = vector.extract %71[0, 0, 0] : f32 from vector<1x1x1xf32>
    %cst_21 = arith.constant 3.200000e+01 : f32
    %73 = arith.divf %72, %cst_21 : f32
    %cst_22 = arith.constant 1.000000e+00 : f32
    %74 = arith.mulf %cst_22, %45 : f32
    %cst_23 = arith.constant 1.000000e+00 : f32
    %75 = arith.mulf %cst_23, %16 : f32
    %76 = arith.addf %74, %75 : f32
    %cst_24 = arith.constant 1.000000e+00 : f32
    %77 = arith.mulf %cst_24, %73 : f32
    %78 = arith.addf %76, %77 : f32
    %c0_25 = arith.constant 0 : index
    %79 = memref.load %arg4[%c0_25] : memref<4xf32, #tpu.memory_space<smem>>
    memref.store %78, %arg4[%c0_25] : memref<4xf32, #tpu.memory_space<smem>>
    %c1_26 = arith.constant 1 : index
    %80 = memref.load %arg4[%c1_26] : memref<4xf32, #tpu.memory_space<smem>>
    memref.store %45, %arg4[%c1_26] : memref<4xf32, #tpu.memory_space<smem>>
    %c2 = arith.constant 2 : index
    %81 = memref.load %arg4[%c2] : memref<4xf32, #tpu.memory_space<smem>>
    memref.store %16, %arg4[%c2] : memref<4xf32, #tpu.memory_space<smem>>
    %c3 = arith.constant 3 : index
    %82 = memref.load %arg4[%c3] : memref<4xf32, #tpu.memory_space<smem>>
    memref.store %73, %arg4[%c3] : memref<4xf32, #tpu.memory_space<smem>>
    return
  }
}

</mosaic_0001>

<bundles_post_ra>
// kernel: _vicreg_forward.4
= control target key start
LH: loop header
LB: loop body
LE: loop exit
PB: predicated region body
PF: predicated region fallthrough
CT: control target
= control target key end

     0   :  { %s348_s9 = smov 0   ;;  %s350_s10 = smov 0   ;;  %s381_s0 = inlined_call_operand.vmem [shape: f32[16,128], index: 0, kind: input, shape index: {}]   ;;  %s382_s1 = inlined_call_operand.vmem [shape: f32[16,128], index: 1, kind: input, shape index: {}]   ;;  %s383_s2 = inlined_call_operand.vmem [shape: f32[16,128], index: 2, kind: output, shape index: {}]  }
   0x1   :  { %s352_s11 = smov 0  }
   0x2 LB: > { %s24_s12 = sadd.s32 1, %s326_s10  ;;  %p277_p0 = scmp.ge.s32.totalorder %s330_s11, 1  ;;  %s330_s11 = sphi %s352_s11, %s12_s11   ;;  %s326_s10 = sphi %s350_s10, %s385_s10   ;;  %s322_s9 = sphi %s348_s9, %s384_s9  }
   0x3   : > { %p26_p1 = scmp.ge.s32.totalorder %s24_s12, 2  ;;  %p140_p2 = scmp.lt.s32.totalorder %s330_s11, 3 }
   0x5   : > { %s387_s12 = smov (%p26_p1, %s24_s12), 0  ;;  %p141_p3 = pnand %p277_p0, %p140_p2 }
   0x6   : > { %p167_p4 = scmp.lt.s32.totalorder (!%p141_p3), %s322_s9, 1 }
   0x7   : > { %144 = sbr.rel (%p141_p3) target bundleno = 36 (0x24), region = 28 }
   0xc   : > { %s389_s9 = smov (!%p167_p4, %s322_s9), 1  ;;  %v332_v2 = vmov 0.0  }
   0xd   : > { %s278_s13 = sshll.u32 %s389_s9, 3 }
   0xe   : > { %s170_s16 = scalar_lea.vmem %s381_s0, %s278_s13  ;;  %s176_s19 = scalar_lea.vmem %s382_s1, %s278_s13 }
   0xf   : > { %s181_s22 = scalar_lea.vmem %s383_s2, %s278_s13  ;;  %v187_v0 = vld [vmem:[%s170_s16] sm:$0xff] }
  0x10   : > { %v188_v1 = vld [vmem:[%s176_s19] sm:$0xff]  ;;  %186 = vst [vmem:[%s181_s22] sm:$0xff] %v332_v2 }
  0x11   : > { %v189_v3 = vsub.f32 %v187_v0, %v188_v1 }
  0x13   : > { %v191_v4 = vmul.f32 %v189_v3, %v189_v3 }
  0x15   : > { %v192_v5 = vrot.slane %v191_v4, 4 }
  0x17   : > { %v193_v6 = vadd.f32 %v192_v5, %v191_v4  ;;  %v190_v10 = vld [vmem:[%s181_s22] sm:$0x1] }
  0x19   : > { %v194_v7 = vrot.slane %v193_v6, 2 }
  0x1b   : > { %v195_v8 = vadd.f32 %v194_v7, %v193_v6 }
  0x1d   : > { %v196_v9 = vrot.slane %v195_v8, 1 }
  0x1f   : > { %v197_v11 = vadd.f32 %v196_v9, %v195_v8 }
  0x21   : > { %v198_v12 = vadd.f32 %v197_v11, %v190_v10 }
  0x23   : > { %199 = vst [vmem:[%s181_s22] sm:$0x1] %v198_v12 }
  0x24 PF: > { %s12_s11 = sadd.s32 1, %s330_s11   ;;  %s384_s9 = smov %s326_s10 }
  0x25   : > { %p9_p5 = scmp.ge.s32.totalorder %s12_s11, 4   ;;  %s385_s10 = smov %s387_s12 }
  0x27   :  { %11 = sbr.rel (!%p9_p5) target bundleno = 2 (0x2), region = 65 }

// kernel: _vicreg_forward.3
= control target key start
LH: loop header
LB: loop body
LE: loop exit
PB: predicated region body
PF: predicated region fallthrough
CT: control target
= control target key end

     0   :  { %s998_s18 = smov 0   ;;  %s1000_s19 = smov 0   ;;  %s1105_s0 = inlined_call_operand.vmem [shape: f32[16,128], index: 0, kind: input, shape index: {}]   ;;  %s1106_s1 = inlined_call_operand.vmem [shape: f32[16,128], index: 1, kind: input, shape index: {}]   ;;  %s1107_s2 = inlined_call_operand.vmem [shape: f32[16,1], index: 2, kind: input, shape index: {}]   ;;  %s1108_s3 = inlined_call_operand.vmem [shape: f32[16,1], index: 3, kind: input, shape index: {}]   ;;  %s1109_s4 = inlined_call_operand.vmem [shape: f32[256,128], index: 4, kind: output, shape index: {0}]   ;;  %s1110_s5 = inlined_call_operand.vmem [shape: f32[16,128], index: 5, kind: output, shape index: {1}]  }
   0x1   :  { %s1002_s20 = smov 0  }
   0x2 LB: > { %s28_s21 = sadd.s32 1, %s960_s19  ;;  %p871_p0 = scmp.ge.s32.totalorder %s964_s20, 1  ;;  %s964_s20 = sphi %s1002_s20, %s16_s20   ;;  %s960_s19 = sphi %s1000_s19, %s1112_s19   ;;  %s956_s18 = sphi %s998_s18, %s1111_s18  }
   0x3   : > { %p30_p1 = scmp.ge.s32.totalorder %s28_s21, 2  ;;  %p244_p2 = scmp.lt.s32.totalorder %s964_s20, 3 }
   0x5   : > { %s1114_s21 = smov (%p30_p1, %s28_s21), 0  ;;  %p245_p3 = pnand %p871_p0, %p244_p2 }
   0x6   : > { %p292_p4 = scmp.lt.s32.totalorder (!%p245_p3), %s956_s18, 1  ;;  %s876_s14 = sshll.u32 (!%p245_p3), %s956_s18, 4 }
   0x7   : > { %248 = sbr.rel (%p245_p3) target bundleno = 690 (0x2b2), region = 36  ;;  %p316_p5 = scmp.lt.s32.totalorder (!%p245_p3), %s876_s14, 31 }
   0xc   : > { %v966_v0 = vmov 0   ;;  %s293_s22 = scalar_select %p292_p4, %s956_s18, 1  ;;  %v967_v1 = vmov 0.0   ;;  %vm444_vm0 = vcmask 64512  }
   0xd   : > { %941 = vset.pattern.permute.xlu0 %v966_v0  ;;  %s1116_s14 = smov (!%p316_p5, %s876_s14), 31 }
   0xe   : > { %s872_s23 = sshll.u32 %s293_s22, 3  ;;  %s877_s15 = sshll.u32 %s1116_s14, 3 }
   0xf   : > { %s307_s26 = scalar_lea.vmem %s1107_s2, %s872_s23  ;;  %s1026_s29 = scalar_lea.vmem %s1110_s5, %s872_s23 }
  0x10   : > { %345 = vst [vmem:[%s1026_s29] sm:$0xff] %v967_v1  ;;  %v347_v2 = vld [vmem:[%s307_s26] sm:$0xff]  ;;  %s313_s7 = scalar_lea.vmem %s1108_s3, %s872_s23  ;;  %s295_s10 = scalar_lea.vmem %s1105_s0, %s872_s23 }
  0x11   : > { %350 = vperm.xlu0 %941, %v347_v2   ;;  %v355_v3 = vld [vmem:[%s313_s7] sm:$0xff]  ;;  %s301_s13 = scalar_lea.vmem %s1106_s1, %s872_s23  ;;  %s1078_s22 = scalar_lea.vmem %s1109_s4, %s877_s15 }
  0x12   : > { %v346_v4 = vld [vmem:[%s295_s10] sm:$0xff] }
  0x13   : > { %v354_v11 = vld [vmem:[%s301_s13] sm:$0xff] }
  0x17   : > { %v390_v34 = vld [vmem:[%s1026_s29] sm:$0x1]  ;;  %v393_v38 = vld [vmem:[%s1026_s29 + $0x1] sm:$0x1] }
  0x19   : > { %358 = vperm.xlu0 %941, %v355_v3  }
  0x83   : > { %v351_v5 = vpop.permute.xlu0 %350 }
  0x84   : > { %v353_v6 = vmul.f32 %v351_v5, %v346_v4 }
  0x86   : > { %v362_v7 = vrot.slane %v353_v6, 4  ;;  %v375_v8 = vmul.f32 %v353_v6, %v353_v6  ;;  %653 = vmatpush.msra.mxu1 %v353_v6  ;;  %914 = vmatpush.msra.mxu3 %v353_v6 }
  0x88   : > { %v363_v9 = vadd.f32 %v362_v7, %v353_v6  ;;  %v376_v10 = vrot.slane %v375_v8, 4 }
  0x8a   : > { %v377_v12 = vadd.f32 %v376_v10, %v375_v8  ;;  %v364_v14 = vrot.slane %v363_v9, 2 }
  0x8b   : > { %v359_v13 = vpop.permute.xlu0 %358 }
  0x8c   : > { %v361_v15 = vmul.f32 %v359_v13, %v354_v11  ;;  %v378_v16 = vrot.slane %v377_v12, 2  ;;  %v365_v19 = vadd.f32 %v364_v14, %v363_v9 }
  0x8e   : > { %v368_v17 = vrot.slane %v361_v15, 4  ;;  %v382_v18 = vmul.f32 %v361_v15, %v361_v15  ;;  %412 = vxpose.xlu1.b32.start.end [1/1] (short) %v361_v15, 128  ;;  %508 = vmatpush.msra.mxu0 %v361_v15  ;;  %v379_v22 = vadd.f32 %v378_v16, %v377_v12  ;;  %v366_v25 = vrot.slane %v365_v19, 1 }
  0x8f   : > { %913 = vmatpush.msra.mxu2 %v361_v15 }
  0x90   : > { %v369_v20 = vadd.f32 %v368_v17, %v361_v15  ;;  %v383_v21 = vrot.slane %v382_v18, 4  ;;  %v380_v28 = vrot.slane %v379_v22, 1  ;;  %v367_v31 = vadd.f32 %v366_v25, %v365_v19 }
  0x92   : > { %v370_v23 = vrot.slane %v369_v20, 2  ;;  %v384_v24 = vadd.f32 %v383_v21, %v382_v18  ;;  %v381_v35 = vadd.f32 %v380_v28, %v379_v22 }
  0x94   : > { %v371_v26 = vadd.f32 %v370_v23, %v369_v20  ;;  %v385_v27 = vrot.slane %v384_v24, 2 }
  0x96   : > { %v372_v29 = vrot.slane %v371_v26, 1  ;;  %v386_v30 = vadd.f32 %v385_v27, %v384_v24 }
  0x98   : > { %v373_v32 = vadd.f32 %v372_v29, %v371_v26  ;;  %v387_v33 = vrot.slane %v386_v30, 1 }
  0x9a   : > { %v374_v36 = vadd.f32 %v373_v32, %v367_v31  ;;  %v388_v37 = vadd.f32 %v387_v33, %v386_v30 }
  0x9c   : > { %v389_v39 = vadd.f32 %v388_v37, %v381_v35  ;;  %v391_v40 = vadd.f32 %v390_v34, %v374_v36 }
  0x9e   : > { %392 = vst [vmem:[%s1026_s29] sm:$0x1] %v391_v40  ;;  %v394_v41 = vadd.f32 %v393_v38, %v389_v39 }
  0xa0   : > { %395 = vst [vmem:[%s1026_s29 + $0x1] sm:$0x1] %v394_v41 }
 0x10e   : > { %558 = vxpose.xlu1.b32.start.end [1/1] (short) %v353_v6, 128 }
 0x132   : > { %v428_v42 = vpop.trf.xlu1 }
 0x133   : > { %879 = vmatmul.msk.f32.vlgmr.msra.gmra.mxu0 %vm444_vm0, %v428_v42 }
 0x13a   : > { %v429_v43 = vpop.trf.xlu1 }
 0x13b   : > { %880 = vmatmul.msk.f32.gmra.mxu0 %vm444_vm0, %v429_v43 }
 0x142   : > { %v430_v44 = vpop.trf.xlu1 }
 0x143   : > { %881 = vmatmul.msk.f32.gmra.mxu0 %vm444_vm0, %v430_v44 }
 0x14a   : > { %v431_v45 = vpop.trf.xlu1 }
 0x14b   : > { %882 = vmatmul.msk.f32.gmra.mxu0 %vm444_vm0, %v431_v45 }
 0x152   : > { %v432_v46 = vpop.trf.xlu1 }
 0x153   : > { %883 = vmatmul.msk.f32.gmra.mxu0 %vm444_vm0, %v432_v46 }
 0x15a   : > { %v433_v47 = vpop.trf.xlu1 }
 0x15b   : > { %884 = vmatmul.msk.f32.gmra.mxu0 %vm444_vm0, %v433_v47 }
 0x162   : > { %v434_v48 = vpop.trf.xlu1 }
 0x163   : > { %885 = vmatmul.msk.f32.gmra.mxu0 %vm444_vm0, %v434_v48 }
 0x16a   : > { %v435_v49 = vpop.trf.xlu1 }
 0x16b   : > { %886 = vmatmul.msk.f32.gmra.mxu0 %vm444_vm0, %v435_v49 }
 0x172   : > { %v436_v50 = vpop.trf.xlu1 }
 0x173   : > { %887 = vmatmul.msk.f32.vlgmr.msra.gmra.mxu2 %vm444_vm0, %v436_v50 }
 0x17a   : > { %v437_v51 = vpop.trf.xlu1 }
 0x17b   : > { %888 = vmatmul.msk.f32.gmra.mxu2 %vm444_vm0, %v437_v51 }
 0x182   : > { %v438_v52 = vpop.trf.xlu1 }
 0x183   : > { %889 = vmatmul.msk.f32.gmra.mxu2 %vm444_vm0, %v438_v52 }
 0x18a   : > { %v439_v53 = vpop.trf.xlu1 }
 0x18b   : > { %890 = vmatmul.msk.f32.gmra.mxu2 %vm444_vm0, %v439_v53 }
 0x192   : > { %v440_v54 = vpop.trf.xlu1 }
 0x193   : > { %891 = vmatmul.msk.f32.gmra.mxu2 %vm444_vm0, %v440_v54 }
 0x19a   : > { %v441_v55 = vpop.trf.xlu1 }
 0x19b   : > { %892 = vmatmul.msk.f32.gmra.mxu2 %vm444_vm0, %v441_v55 }
 0x1a2   : > { %v442_v56 = vpop.trf.xlu1 }
 0x1a3   : > { %893 = vmatmul.msk.f32.gmra.mxu2 %vm444_vm0, %v442_v56 }
 0x1aa   : > { %v443_v57 = vpop.trf.xlu1 }
 0x1ab   : > { %894 = vmatmul.msk.f32.gmra.mxu2 %vm444_vm0, %v443_v57 }
 0x1b0   : > { %v510_v8 = vpop.f32.mrf.mxu0 }
 0x1b2   : > { %v574_v58 = vpop.trf.xlu1 }
 0x1b3   : > { %895 = vmatmul.msk.f32.vlgmr.msra.gmra.mxu1 %vm444_vm0, %v574_v58 }
 0x1b8   : > { %v513_v11 = vpop.f32.mrf.mxu0 }
 0x1ba   : > { %v575_v59 = vpop.trf.xlu1 }
 0x1bb   : > { %896 = vmatmul.msk.f32.gmra.mxu1 %vm444_vm0, %v575_v59 }
 0x1c0   : > { %v516_v14 = vpop.f32.mrf.mxu0 }
 0x1c2   : > { %v576_v60 = vpop.trf.xlu1 }
 0x1c3   : > { %897 = vmatmul.msk.f32.gmra.mxu1 %vm444_vm0, %v576_v60 }
 0x1c8   : > { %v519_v17 = vpop.f32.mrf.mxu0 }
 0x1ca   : > { %v577_v61 = vpop.trf.xlu1 }
 0x1cb   : > { %898 = vmatmul.msk.f32.gmra.mxu1 %vm444_vm0, %v577_v61 }
 0x1d0   : > { %v522_v21 = vpop.f32.mrf.mxu0 }
 0x1d2   : > { %v578_v62 = vpop.trf.xlu1 }
 0x1d3   : > { %899 = vmatmul.msk.f32.gmra.mxu1 %vm444_vm0, %v578_v62 }
 0x1d8   : > { %v525_v25 = vpop.f32.mrf.mxu0 }
 0x1da   : > { %v579_v63 = vpop.trf.xlu1 }
 0x1db   : > { %900 = vmatmul.msk.f32.gmra.mxu1 %vm444_vm0, %v579_v63 }
 0x1e0   : > { %v528_v28 = vpop.f32.mrf.mxu0 }
 0x1e2   : > { %v580_v0 = vpop.trf.xlu1 }
 0x1e3   : > { %901 = vmatmul.msk.f32.gmra.mxu1 %vm444_vm0, %v580_v0 }
 0x1e8   : > { %v531_v31 = vpop.f32.mrf.mxu0 }
 0x1ea   : > { %v581_v1 = vpop.trf.xlu1 }
 0x1eb   : > { %902 = vmatmul.msk.f32.gmra.mxu1 %vm444_vm0, %v581_v1 }
 0x1f2   : > { %v582_v2 = vpop.trf.xlu1 }
 0x1f3   : > { %903 = vmatmul.msk.f32.vlgmr.msra.gmra.mxu3 %vm444_vm0, %v582_v2 }
 0x1f6   : > { %v534_v32 = vpop.f32.mrf.mxu2 }
 0x1fa   : > { %v583_v3 = vpop.trf.xlu1 }
 0x1fb   : > { %904 = vmatmul.msk.f32.gmra.mxu3 %vm444_vm0, %v583_v3 }
 0x1fe   : > { %v537_v35 = vpop.f32.mrf.mxu2 }
 0x202   : > { %v584_v4 = vpop.trf.xlu1 }
 0x203   : > { %905 = vmatmul.msk.f32.gmra.mxu3 %vm444_vm0, %v584_v4 }
 0x206   : > { %v540_v38 = vpop.f32.mrf.mxu2 }
 0x20a   : > { %v585_v5 = vpop.trf.xlu1 }
 0x20b   : > { %906 = vmatmul.msk.f32.gmra.mxu3 %vm444_vm0, %v585_v5 }
 0x20e   : > { %v543_v41 = vpop.f32.mrf.mxu2 }
 0x212   : > { %v586_v6 = vpop.trf.xlu1 }
 0x213   : > { %907 = vmatmul.msk.f32.gmra.mxu3 %vm444_vm0, %v586_v6 }
 0x216   : > { %v546_v46 = vpop.f32.mrf.mxu2 }
 0x21a   : > { %v587_v7 = vpop.trf.xlu1 }
 0x21b   : > { %908 = vmatmul.msk.f32.gmra.mxu3 %vm444_vm0, %v587_v7 }
 0x21e   : > { %v549_v49 = vpop.f32.mrf.mxu2 }
 0x222   : > { %v588_v9 = vpop.trf.xlu1 }
 0x223   : > { %909 = vmatmul.msk.f32.gmra.mxu3 %vm444_vm0, %v588_v9 }
 0x226   : > { %v552_v52 = vpop.f32.mrf.mxu2 }
 0x22a   : > { %v589_v10 = vpop.trf.xlu1 }
 0x22b   : > { %910 = vmatmul.msk.f32.gmra.mxu3 %vm444_vm0, %v589_v10 }
 0x22e   : > { %v555_v55 = vpop.f32.mrf.mxu2 }
 0x230   : > { %v655_v12 = vpop.f32.mrf.mxu1 }
 0x231   : > { %v656_v13 = vadd.f32 %v655_v12, %v510_v8 }
 0x233   : > { %719 = vst [vmem:[%s1078_s22] sm:$0xff] %v656_v13 }
 0x238   : > { %v658_v15 = vpop.f32.mrf.mxu1 }
 0x239   : > { %v659_v16 = vadd.f32 %v658_v15, %v513_v11 }
 0x23b   : > { %720 = vst [vmem:[%s1078_s22 + $0x8] sm:$0xff] %v659_v16 }
 0x240   : > { %v661_v18 = vpop.f32.mrf.mxu1 }
 0x241   : > { %v662_v19 = vadd.f32 %v661_v18, %v516_v14 }
 0x243   : > { %721 = vst [vmem:[%s1078_s22 + $0x10] sm:$0xff] %v662_v19 }
 0x248   : > { %v664_v20 = vpop.f32.mrf.mxu1 }
 0x249   : > { %v665_v22 = vadd.f32 %v664_v20, %v519_v17 }
 0x24b   : > { %722 = vst [vmem:[%s1078_s22 + $0x18] sm:$0xff] %v665_v22 }
 0x250   : > { %v667_v23 = vpop.f32.mrf.mxu1 }
 0x251   : > { %v668_v24 = vadd.f32 %v667_v23, %v522_v21 }
 0x253   : > { %723 = vst [vmem:[%s1078_s22 + $0x20] sm:$0xff] %v668_v24 }
 0x258   : > { %v670_v26 = vpop.f32.mrf.mxu1 }
 0x259   : > { %v671_v27 = vadd.f32 %v670_v26, %v525_v25 }
 0x25b   : > { %724 = vst [vmem:[%s1078_s22 + $0x28] sm:$0xff] %v671_v27 }
 0x260   : > { %v673_v29 = vpop.f32.mrf.mxu1 }
 0x261   : > { %v674_v30 = vadd.f32 %v673_v29, %v528_v28 }
 0x263   : > { %725 = vst [vmem:[%s1078_s22 + $0x30] sm:$0xff] %v674_v30 }
 0x268   : > { %v676_v33 = vpop.f32.mrf.mxu1 }
 0x269   : > { %v677_v34 = vadd.f32 %v676_v33, %v531_v31 }
 0x26b   : > { %726 = vst [vmem:[%s1078_s22 + $0x38] sm:$0xff] %v677_v34 }
 0x276   : > { %v679_v36 = vpop.f32.mrf.mxu3 }
 0x277   : > { %v680_v37 = vadd.f32 %v679_v36, %v534_v32 }
 0x279   : > { %727 = vst [vmem:[%s1078_s22 + $0x40] sm:$0xff] %v680_v37 }
 0x27e   : > { %v682_v39 = vpop.f32.mrf.mxu3 }
 0x27f   : > { %v683_v40 = vadd.f32 %v682_v39, %v537_v35 }
 0x281   : > { %728 = vst [vmem:[%s1078_s22 + $0x48] sm:$0xff] %v683_v40 }
 0x286   : > { %v685_v42 = vpop.f32.mrf.mxu3 }
 0x287   : > { %v686_v43 = vadd.f32 %v685_v42, %v540_v38 }
 0x289   : > { %729 = vst [vmem:[%s1078_s22 + $0x50] sm:$0xff] %v686_v43 }
 0x28e   : > { %v688_v44 = vpop.f32.mrf.mxu3 }
 0x28f   : > { %v689_v45 = vadd.f32 %v688_v44, %v543_v41 }
 0x291   : > { %730 = vst [vmem:[%s1078_s22 + $0x58] sm:$0xff] %v689_v45 }
 0x296   : > { %v691_v47 = vpop.f32.mrf.mxu3 }
 0x297   : > { %v692_v48 = vadd.f32 %v691_v47, %v546_v46 }
 0x299   : > { %731 = vst [vmem:[%s1078_s22 + $0x60] sm:$0xff] %v692_v48 }
 0x29e   : > { %v694_v50 = vpop.f32.mrf.mxu3 }
 0x29f   : > { %v695_v51 = vadd.f32 %v694_v50, %v549_v49 }
 0x2a1   : > { %732 = vst [vmem:[%s1078_s22 + $0x68] sm:$0xff] %v695_v51 }
 0x2a6   : > { %v697_v53 = vpop.f32.mrf.mxu3 }
 0x2a7   : > { %v698_v54 = vadd.f32 %v697_v53, %v552_v52 }
 0x2a9   : > { %733 = vst [vmem:[%s1078_s22 + $0x70] sm:$0xff] %v698_v54 }
 0x2ae   : > { %v700_v56 = vpop.f32.mrf.mxu3 }
 0x2af   : > { %v701_v57 = vadd.f32 %v700_v56, %v555_v55 }
 0x2b1   : > { %734 = vst [vmem:[%s1078_s22 + $0x78] sm:$0xff] %v701_v57 }
 0x2b2 PF: > { %s16_s20 = sadd.s32 1, %s964_s20   ;;  %s1111_s18 = smov %s960_s19 }
 0x2b3   : > { %p13_p6 = scmp.ge.s32.totalorder %s16_s20, 4   ;;  %s1112_s19 = smov %s1114_s21 }
 0x2b5   :  { %15 = sbr.rel (!%p13_p6) target bundleno = 2 (0x2), region = 91 }

// kernel: _vicreg_forward.5
= control target key start
LH: loop header
LB: loop body
LE: loop exit
PB: predicated region body
PF: predicated region fallthrough
CT: control target
= control target key end

     0   :  { %9 = vsyncpa [#allocation3], 0  ;;  %s961_s0 = inlined_call_operand.vmem [shape: f32[2], index: 0, kind: input, shape index: {}]   ;;  %s962_s1 = inlined_call_operand.vmem [shape: f32[256,128], index: 1, kind: input, shape index: {}]   ;;  %s963_s2 = inlined_call_operand.vmem [shape: f32[16,128], index: 2, kind: input, shape index: {}]   ;;  %s964_s3 = inlined_call_operand.vmem [shape: f32[16,128], index: 3, kind: input, shape index: {}]   ;;  %s965_s4 = inlined_call_operand.vmem [shape: f32[4], index: 4, kind: output, shape index: {}]  }
   0x1   :  { %10 = vsyncpa [#allocation4], 0  ;;  %s16_s17 = sshll.u32 %s961_s0, 4  ;;  %s662_s18 = smov [#allocation2]   ;;  %s17_s17 = int_to_ptr.vmem [resolvable:$true] %s16_s17 }
   0x2   :  { %19 = dma.vmem_to_smem %s17_s17, 16, %s662_s18, [#allocation3]  }
   0x3   :  { %658 = dma.done.wait [#allocation3], 16  }
   0x4   :  { %659 = vsyncadd [#allocation3], 4294967280 }
   0x5   :  { %30 = sfence }
   0x6   :  { %v50_v0 = vld [vmem:[%s964_s3] sm:$0xff]  ;;  %v85_v1 = vld [vmem:[%s964_s3 + $0x8] sm:$0xff]  ;;  %s569_s23 = sld [smem:[#allocation2 + $0x1]]  ;;  %v166_v39 = vlaneseq  ;;  %v663_v48 = vmov 0.0   ;;  %vm177_vm11 = vcmask 1040384   ;;  %s665_s25 = smov [#allocation5]  }
   0x7   :  { %v86_v2 = vadd.f32 %v85_v1, %v50_v0  ;;  %v49_v12 = vld [vmem:[%s963_s2] sm:$0xff]  ;;  %v83_v13 = vld [vmem:[%s963_s2 + $0x8] sm:$0xff]  ;;  %s31_s2 = sld [smem:[#allocation2]] }
   0x8   :  { %v713_v17 = vadd.f32 %v83_v13, %v49_v12  ;;  %v725_v42 = vand.u32 127, %v166_v39 }
   0x9   :  { %87 = vadd.xlane.f32.xlu0 %v86_v2 }
   0xa   :  { %vm168_vm10 = vcmp.lt.s32.totalorder %v725_v42, 32 }
   0xb   :  { %v571_v49 = vsel %vm168_vm10, 1.0, %v663_v48 }
   0xc   :  { %v700_v3 = vstv %s569_s23  ;;  %s570_s0 = sadd.f32 -1.0, %s569_s23  ;;  %s558_s23 = sshll.u32 %s965_s4, 4  ;;  %s559_s23 = int_to_ptr.vmem [resolvable:$true] %s558_s23 }
   0xd   :  { %624 = vrcp.f32 %v700_v3  ;;  %vm120_vm0 = vweird.f32 %v700_v3  ;;  %v126_v8 = vand.u32 2147483648, %v700_v3  ;;  %v124_v10 = vand.u32 2147483647, %v700_v3  ;;  %s96_s27 = smul.f32 32.0, %s31_s2 }
   0xe   :  { %v137_v4 = vstv %s570_s0 }
   0xf   :  { %626 = vrcp.f32 %v137_v4  ;;  %v127_v16 = vor.u32 1.1754944e-38, %v126_v8  ;;  %vm125_vm3 = vcmp.eq.f32.partialorder %v124_v10, 8.507059e+37  ;;  %vm143_vm4 = vweird.f32 %v137_v4 }
  0x10   :  { %v149_v22 = vand.u32 2147483648, %v137_v4  ;;  %v147_v25 = vand.u32 2147483647, %v137_v4  ;;  %v97_v54 = vstv %s96_s27 }
  0x11   :  { %vm103_vm12 = vweird.f32 %v97_v54  ;;  %v109_v62 = vand.u32 2147483648, %v97_v54  ;;  %v107_v0 = vand.u32 2147483647, %v97_v54 }
  0x12   :  { %v150_v27 = vor.u32 1.1754944e-38, %v149_v22  ;;  %vm148_vm7 = vcmp.eq.f32.partialorder %v147_v25, 8.507059e+37  ;;  %v734_v25 = vshrl.u32 %v166_v39, 7 }
  0x13   :  { %v625_v5 = vpop.eup %624  ;;  %vm108_vm15 = vcmp.eq.f32.partialorder %v107_v0, 8.507059e+37  ;;  %v54_v0 = vld [vmem:[%s962_s1 + $0x98] sm:$0xff] }
  0x14   :  { %v116_v6 = vmul.f32 %v625_v5, %v700_v3  ;;  %vm121_vm1 = vweird.f32 %v625_v5 }
  0x15   :  { %v627_v7 = vpop.eup %626  ;;  %vm122_vm2 = vmor %vm120_vm0, %vm121_vm1  ;;  %vm199_vm1 = vcmp.eq.s32.totalorder %v734_v25, 0 }
  0x16   :  { %v117_v9 = vsub.f32 1.0, %v116_v6  ;;  %v139_v11 = vmul.f32 %v627_v7, %v137_v4  ;;  %vm144_vm5 = vweird.f32 %v627_v7  ;;  %v110_v4 = vor.u32 1.1754944e-38, %v109_v62 }
  0x17   :  { %vm145_vm6 = vmor %vm143_vm4, %vm144_vm5  ;;  %vm430_vm4 = vcmp.ne.s32.totalorder %v734_v25, %v725_v42 }
  0x18   :  { %v118_v14 = vmul.f32 %v625_v5, %v117_v9  ;;  %v140_v15 = vsub.f32 1.0, %v139_v11  ;;  %v664_v9 = vmov 32.0  }
  0x1a   :  { %v119_v18 = vadd.f32 %v625_v5, %v118_v14  ;;  %v141_v19 = vmul.f32 %v627_v7, %v140_v15 }
  0x1c   :  { %v123_v20 = vsel %vm122_vm2, %v625_v5, %v119_v18  ;;  %v142_v24 = vadd.f32 %v627_v7, %v141_v19  ;;  %vm253_vm2 = vcmask 64512  }
  0x1d   :  { %v715_v21 = vsel %vm125_vm3, %v127_v16, %v123_v20 }
  0x1e   :  { %v129_v23 = vmul.f32 %v715_v21, %v713_v17  ;;  %v146_v29 = vsel %vm145_vm6, %v627_v7, %v142_v24 }
  0x1f   :  { %v720_v31 = vsel %vm148_vm7, %v150_v27, %v146_v29 }
  0x20   :  { %v130_v26 = vmul.f32 %v129_v23, %v700_v3 }
  0x22   :  { %v131_v28 = vmul.f32 %v130_v26, %v129_v23  ;;  %v572_v26 = vsel %vm199_vm1, 1.0, %v663_v48 }
  0x23   :  { %v202_v27 = vmul.f32 %v572_v26, %v713_v17  ;;  %v56_v26 = vld [vmem:[%s962_s1 + $0xa8] sm:$0xff] }
  0x24   :  { %v133_v30 = vrot.slane %v131_v28, 7 }
  0x26   :  { %v135_v32 = vsub.f32 %v713_v17, %v133_v30 }
  0x28   :  { %v152_v33 = vmul.f32 %v720_v31, %v135_v32 }
  0x2a   :  { %v153_v34 = vadd.f32 1e-05, %v152_v33 }
  0x2c   :  { %628 = vrsqrt.f32 %v153_v34  ;;  %vm161_vm8 = vcmp.eq.f32.partialorder %v153_v34, inf  ;;  %v164_v43 = vand.u32 2147483648, %v153_v34  ;;  %vm163_vm9 = vcmp.eq.f32.partialorder %v153_v34, 0.0 }
  0x2d   :  { %630 = vrcp.f32 %v97_v54 }
  0x2e   :  { %632 = vrcp.f32 %v664_v9  ;;  %v37_v9 = vld [vmem:[%s962_s1 + $0x20] sm:$0xff] }
  0x32   :  { %v629_v35 = vpop.eup %628 }
  0x33   :  { %v155_v36 = vmul.f32 %v629_v35, %v153_v34  ;;  %v631_v55 = vpop.eup %630 }
  0x34   :  { %v99_v56 = vmul.f32 %v631_v55, %v97_v54  ;;  %vm104_vm13 = vweird.f32 %v631_v55  ;;  %v633_v10 = vpop.eup %632  ;;  %v52_v54 = vld [vmem:[%s962_s1 + $0x88] sm:$0xff] }
  0x35   :  { %v156_v37 = vmul.f32 %v629_v35, %v155_v36  ;;  %vm105_vm14 = vmor %vm103_vm12, %vm104_vm13  ;;  %v189_v11 = vmul.f32 32.0, %v633_v10  ;;  %vm193_vm0 = vweird.f32 %v633_v10 }
  0x36   :  { %v100_v57 = vsub.f32 1.0, %v99_v56  ;;  %v51_v56 = vld [vmem:[%s962_s1 + $0x80] sm:$0xff] }
  0x37   :  { %v157_v38 = vmul.f32 0.5, %v156_v37  ;;  %v190_v12 = vsub.f32 1.0, %v189_v11 }
  0x38   :  { %v101_v59 = vmul.f32 %v631_v55, %v100_v57  ;;  %v35_v57 = vld [vmem:[%s962_s1 + $0x10] sm:$0xff] }
  0x39   :  { %v158_v40 = vsub.f32 1.5, %v157_v38  ;;  %v191_v16 = vmul.f32 %v633_v10, %v190_v12 }
  0x3a   :  { %v102_v63 = vadd.f32 %v631_v55, %v101_v59 }
  0x3b   :  { %v159_v41 = vmul.f32 %v629_v35, %v158_v40  ;;  %v192_v20 = vadd.f32 %v633_v10, %v191_v16 }
  0x3c   :  { %v106_v5 = vsel %vm105_vm14, %v631_v55, %v102_v63  ;;  %v33_v55 = vld [vmem:[%s962_s1] sm:$0xff]  ;;  %v36_v63 = vld [vmem:[%s962_s1 + $0x18] sm:$0xff] }
  0x3d   :  { %v160_v44 = vmul.f32 %v159_v41, %v153_v34  ;;  %v111_v8 = vsel %vm108_vm15, %v110_v4, %v106_v5  ;;  %v194_v24 = vsel %vm193_vm0, %v633_v10, %v192_v20  ;;  %v55_v10 = vld [vmem:[%s962_s1 + $0xa0] sm:$0xff] }
  0x3e   :  { %v71_v16 = vadd.f32 %v55_v10, %v37_v9 }
  0x3f   :  { %v162_v45 = vsel %vm161_vm8, %v153_v34, %v160_v44 }
  0x40   :  { %v165_v46 = vsel %vm163_vm9, %v164_v43, %v162_v45 }
  0x41   :  { %v171_v47 = vsub.f32 1.0, %v165_v46 }
  0x43   :  { %v172_v50 = vmax.f32 %v171_v47, 0.0 }
  0x45   :  { %v173_v51 = vmul.f32 %v571_v49, %v172_v50 }
  0x47   :  { %v175_v52 = vrot.slane %v173_v51, 1 }
  0x49   :  { %v178_v53 = vsel %vm177_vm11, %v175_v52, 0.0 }
  0x4a   :  { %179 = vadd.xlane.f32.xlu0 %v178_v53  ;;  %v34_v53 = vld [vmem:[%s962_s1 + $0x8] sm:$0xff] }
  0x4b   :  { %v68_v59 = vadd.f32 %v52_v54, %v34_v53 }
  0x7c   :  { %v88_v58 = vpop.xlane.xlu0 %87 }
  0x7d   :  { %v89_v60 = vrot.slane %v88_v58, 4 }
  0x7f   :  { %v90_v61 = vadd.f32 %v89_v60, %v88_v58  ;;  %v53_v58 = vld [vmem:[%s962_s1 + $0x90] sm:$0xff] }
  0x81   :  { %v91_v1 = vrot.slane %v90_v61, 2 }
  0x83   :  { %v92_v2 = vadd.f32 %v91_v1, %v90_v61  ;;  %v67_v61 = vadd.f32 %v51_v56, %v33_v55  ;;  %v41_v55 = vld [vmem:[%s962_s1 + $0x40] sm:$0xff] }
  0x84   :  { %v59_v56 = vld [vmem:[%s962_s1 + $0xc0] sm:$0xff] }
  0x85   :  { %v93_v6 = vrot.slane %v92_v2, 1 }
  0x87   :  { %v94_v7 = vadd.f32 %v93_v6, %v92_v2  ;;  %v69_v2 = vadd.f32 %v53_v58, %v35_v57 }
  0x89   :  { %608 = vpush %v94_v7  ;;  %v70_v7 = vadd.f32 %v54_v0, %v36_v63  ;;  %v42_v63 = vld [vmem:[%s962_s1 + $0x48] sm:$0xff] }
  0x8a   :  { %610 = vpush %v111_v8  ;;  %v60_v0 = vld [vmem:[%s962_s1 + $0xc8] sm:$0xff] }
  0xba   :  { %s609_s28 = spop %608 }
  0xbb   :  { %s611_s29 = spop %610 }
  0xbc   :  { %s729_s30 = smul.f32 %s611_s29, %s609_s28 }
  0xbd   :  { %v180_v13 = vpop.xlane.xlu0 %179 }
  0xbe   :  { %v181_v14 = vrot.slane %v180_v13, 4  ;;  %550 = sst [smem:[#allocation5 + $0x2]] %s729_s30 }
  0xc0   :  { %v182_v15 = vadd.f32 %v181_v14, %v180_v13  ;;  %v415_v13 = vadd.s32 8, %v734_v25 }
  0xc2   :  { %v183_v18 = vrot.slane %v182_v15, 2  ;;  %vm431_vm3 = vcmp.ne.s32.totalorder %v415_v13, %v725_v42  ;;  %v76_v13 = vadd.f32 %v60_v0, %v42_v63 }
  0xc4   :  { %v184_v19 = vadd.f32 %v183_v18, %v182_v15  ;;  %v416_v15 = vadd.s32 16, %v734_v25 }
  0xc6   :  { %v185_v22 = vrot.slane %v184_v19, 1  ;;  %vm432_vm5 = vcmp.ne.s32.totalorder %v416_v15, %v725_v42  ;;  %v43_v15 = vld [vmem:[%s962_s1 + $0x50] sm:$0xff] }
  0xc8   :  { %v186_v23 = vadd.f32 %v185_v22, %v184_v19 }
  0xca   :  { %612 = vpush %v186_v23  ;;  %v417_v23 = vadd.s32 24, %v734_v25 }
  0xcb   :  { %614 = vpush %v194_v24  ;;  %v38_v24 = vld [vmem:[%s962_s1 + $0x28] sm:$0xff] }
  0xcc   :  { %616 = vpush %v715_v21  ;;  %vm433_vm6 = vcmp.ne.s32.totalorder %v417_v23, %v725_v42  ;;  %v62_v23 = vld [vmem:[%s962_s1 + $0xd8] sm:$0xff] }
  0xfb   :  { %s613_s5 = spop %612 }
  0xfc   :  { %s739_s6 = spop %614 }
  0xfd   :  { %s742_s7 = smul.f32 %s739_s6, %s613_s5  ;;  %s617_s8 = spop %616 }
  0xfe   :  { %v219_v28 = vstv %s617_s8 }
  0xff   :  { %v220_v29 = vmul.f32 %v219_v28, %v202_v27  ;;  %548 = sst [smem:[#allocation5 + $0x1]] %s742_s7 }
 0x100   :  { %s543_s0 = sadd.f32 %s742_s7, %s729_s30 }
 0x101   :  { %221 = vxpose.xlu1.b32.start.end [1/1] (short) %v220_v29, 128  ;;  %317 = vmatpush.msra.mxu0 %v220_v29 }
 0x102   :  { %605 = vmatpush.msra.mxu1 %v220_v29  ;;  %606 = vmatpush.msra.mxu2 %v220_v29 }
 0x103   :  { %607 = vmatpush.msra.mxu3 %v220_v29 }
 0x1a5   :  { %v237_v21 = vpop.trf.xlu1 }
 0x1a6   :  { %573 = vmatmul.msk.f32.vlgmr.msra.gmra.mxu0 %vm253_vm2, %v237_v21 }
 0x1ad   :  { %v238_v17 = vpop.trf.xlu1 }
 0x1ae   :  { %574 = vmatmul.msk.f32.gmra.mxu0 %vm253_vm2, %v238_v17  ;;  %v72_v17 = vadd.f32 %v56_v26, %v38_v24 }
 0x1b5   :  { %v239_v30 = vpop.trf.xlu1 }
 0x1b6   :  { %575 = vmatmul.msk.f32.gmra.mxu0 %vm253_vm2, %v239_v30 }
 0x1bd   :  { %v240_v32 = vpop.trf.xlu1 }
 0x1be   :  { %576 = vmatmul.msk.f32.gmra.mxu0 %vm253_vm2, %v240_v32  ;;  %v39_v32 = vld [vmem:[%s962_s1 + $0x30] sm:$0xff] }
 0x1c5   :  { %v241_v33 = vpop.trf.xlu1 }
 0x1c6   :  { %577 = vmatmul.msk.f32.vlgmr.msra.gmra.mxu1 %vm253_vm2, %v241_v33  ;;  %v57_v33 = vld [vmem:[%s962_s1 + $0xb0] sm:$0xff] }
 0x1cd   :  { %v242_v34 = vpop.trf.xlu1 }
 0x1ce   :  { %578 = vmatmul.msk.f32.gmra.mxu1 %vm253_vm2, %v242_v34 }
 0x1d5   :  { %v243_v35 = vpop.trf.xlu1 }
 0x1d6   :  { %579 = vmatmul.msk.f32.gmra.mxu1 %vm253_vm2, %v243_v35  ;;  %v590_v35 = vsel %vm431_vm3, 1.0, %v663_v48 }
 0x1dd   :  { %v244_v36 = vpop.trf.xlu1 }
 0x1de   :  { %580 = vmatmul.msk.f32.gmra.mxu1 %vm253_vm2, %v244_v36  ;;  %v418_v36 = vadd.s32 32, %v734_v25 }
 0x1e0   :  { %vm434_vm7 = vcmp.ne.s32.totalorder %v418_v36, %v725_v42 }
 0x1e1   :  { %v593_v10 = vsel %vm434_vm7, 1.0, %v663_v48 }
 0x1e5   :  { %v245_v37 = vpop.trf.xlu1 }
 0x1e6   :  { %581 = vmatmul.msk.f32.vlgmr.msra.gmra.mxu2 %vm253_vm2, %v245_v37 }
 0x1ed   :  { %v246_v38 = vpop.trf.xlu1 }
 0x1ee   :  { %582 = vmatmul.msk.f32.gmra.mxu2 %vm253_vm2, %v246_v38  ;;  %v589_v38 = vsel %vm430_vm4, 1.0, %v663_v48 }
 0x1f5   :  { %v247_v39 = vpop.trf.xlu1 }
 0x1f6   :  { %583 = vmatmul.msk.f32.gmra.mxu2 %vm253_vm2, %v247_v39 }
 0x1fd   :  { %v248_v40 = vpop.trf.xlu1 }
 0x1fe   :  { %584 = vmatmul.msk.f32.gmra.mxu2 %vm253_vm2, %v248_v40  ;;  %v419_v40 = vadd.s32 40, %v734_v25 }
 0x200   :  { %vm435_vm8 = vcmp.ne.s32.totalorder %v419_v40, %v725_v42 }
 0x205   :  { %v249_v41 = vpop.trf.xlu1 }
 0x206   :  { %585 = vmatmul.msk.f32.vlgmr.msra.gmra.mxu3 %vm253_vm2, %v249_v41  ;;  %v40_v41 = vld [vmem:[%s962_s1 + $0x38] sm:$0xff] }
 0x20d   :  { %v250_v43 = vpop.trf.xlu1 }
 0x20e   :  { %586 = vmatmul.msk.f32.gmra.mxu3 %vm253_vm2, %v250_v43  ;;  %v58_v43 = vld [vmem:[%s962_s1 + $0xb8] sm:$0xff] }
 0x20f   :  { %v74_v58 = vadd.f32 %v58_v43, %v40_v41  ;;  %v46_v43 = vld [vmem:[%s962_s1 + $0x68] sm:$0xff] }
 0x215   :  { %v251_v44 = vpop.trf.xlu1 }
 0x216   :  { %587 = vmatmul.msk.f32.gmra.mxu3 %vm253_vm2, %v251_v44 }
 0x21d   :  { %v252_v45 = vpop.trf.xlu1 }
 0x21e   :  { %588 = vmatmul.msk.f32.gmra.mxu3 %vm253_vm2, %v252_v45  ;;  %v591_v45 = vsel %vm432_vm5, 1.0, %v663_v48 }
 0x223   :  { %v319_v46 = vpop.f32.mrf.mxu0 }
 0x224   :  { %v367_v62 = vmul.f32 %v319_v46, %v700_v3 }
 0x226   :  { %v383_v12 = vsub.f32 %v67_v61, %v367_v62  ;;  %v420_v61 = vadd.s32 48, %v734_v25  ;;  %v421_v62 = vadd.s32 56, %v734_v25 }
 0x228   :  { %v399_v22 = vmul.f32 %v383_v12, %v720_v31  ;;  %vm436_vm9 = vcmp.ne.s32.totalorder %v420_v61, %v725_v42  ;;  %vm437_vm10 = vcmp.ne.s32.totalorder %v421_v62, %v725_v42  ;;  %v47_v61 = vld [vmem:[%s962_s1 + $0x70] sm:$0xff] }
 0x229   :  { %v596_v40 = vsel %vm437_vm10, 1.0, %v663_v48  ;;  %v65_v62 = vld [vmem:[%s962_s1 + $0xf0] sm:$0xff] }
 0x22a   :  { %v478_v34 = vmul.f32 %v399_v22, %v399_v22  ;;  %v44_v22 = vld [vmem:[%s962_s1 + $0x58] sm:$0xff] }
 0x22b   :  { %v322_v47 = vpop.f32.mrf.mxu0  ;;  %v78_v36 = vadd.f32 %v62_v23, %v44_v22 }
 0x22c   :  { %v368_v60 = vmul.f32 %v322_v47, %v700_v3  ;;  %v73_v47 = vadd.f32 %v57_v33, %v39_v32  ;;  %v494_v57 = vmul.f32 %v589_v38, %v478_v34  ;;  %v423_v32 = vadd.s32 72, %v734_v25  ;;  %v45_v33 = vld [vmem:[%s962_s1 + $0x60] sm:$0xff] }
 0x22d   :  { %v63_v34 = vld [vmem:[%s962_s1 + $0xe0] sm:$0xff] }
 0x22e   :  { %v384_v6 = vsub.f32 %v68_v59, %v368_v60  ;;  %vm439_vm12 = vcmp.ne.s32.totalorder %v423_v32, %v725_v42 }
 0x230   :  { %v400_v19 = vmul.f32 %v384_v6, %v720_v31 }
 0x232   :  { %v479_v29 = vmul.f32 %v400_v19, %v400_v19 }
 0x233   :  { %v325_v50 = vpop.f32.mrf.mxu0 }
 0x234   :  { %v369_v4 = vmul.f32 %v325_v50, %v700_v3  ;;  %v495_v50 = vmul.f32 %v590_v35, %v479_v29  ;;  %v595_v35 = vsel %vm436_vm9, 1.0, %v663_v48 }
 0x236   :  { %v385_v14 = vsub.f32 %v69_v2, %v369_v4  ;;  %v75_v4 = vadd.f32 %v59_v56, %v41_v55 }
 0x238   :  { %v401_v27 = vmul.f32 %v385_v14, %v720_v31 }
 0x23a   :  { %v480_v39 = vmul.f32 %v401_v27, %v401_v27 }
 0x23b   :  { %v328_v1 = vpop.f32.mrf.mxu0 }
 0x23c   :  { %v370_v8 = vmul.f32 %v328_v1, %v700_v3  ;;  %v496_v60 = vmul.f32 %v591_v45, %v480_v39 }
 0x23e   :  { %v386_v20 = vsub.f32 %v70_v7, %v370_v8  ;;  %v510_v8 = vadd.f32 %v495_v50, %v494_v57 }
 0x240   :  { %v402_v21 = vmul.f32 %v386_v20, %v720_v31 }
 0x242   :  { %v481_v53 = vmul.f32 %v402_v21, %v402_v21 }
 0x243   :  { %v331_v49 = vpop.f32.mrf.mxu1 }
 0x244   :  { %v371_v18 = vmul.f32 %v331_v49, %v700_v3 }
 0x246   :  { %v387_v28 = vsub.f32 %v71_v16, %v371_v18  ;;  %v511_v16 = vadd.f32 %v510_v8, %v496_v60  ;;  %v594_v18 = vsel %vm435_vm8, 1.0, %v663_v48  ;;  %v425_v60 = vadd.s32 88, %v734_v25 }
 0x247   :  { %v426_v8 = vadd.s32 96, %v734_v25 }
 0x248   :  { %v403_v46 = vmul.f32 %v387_v28, %v720_v31  ;;  %vm441_vm14 = vcmp.ne.s32.totalorder %v425_v60, %v725_v42 }
 0x249   :  { %vm442_vm15 = vcmp.ne.s32.totalorder %v426_v8, %v725_v42 }
 0x24a   :  { %v482_v1 = vmul.f32 %v403_v46, %v403_v46 }
 0x24b   :  { %v334_v52 = vpop.f32.mrf.mxu1 }
 0x24c   :  { %v372_v30 = vmul.f32 %v334_v52, %v700_v3  ;;  %v592_v52 = vsel %vm433_vm6, 1.0, %v663_v48  ;;  %v498_v19 = vmul.f32 %v593_v10, %v482_v1 }
 0x24d   :  { %v497_v9 = vmul.f32 %v592_v52, %v481_v53 }
 0x24e   :  { %v388_v54 = vsub.f32 %v72_v17, %v372_v30  ;;  %v422_v17 = vadd.s32 64, %v734_v25 }
 0x24f   :  { %v512_v26 = vadd.f32 %v511_v16, %v497_v9  ;;  %v427_v16 = vadd.s32 104, %v734_v25 }
 0x250   :  { %vm438_vm11 = vcmp.ne.s32.totalorder %v422_v17, %v725_v42 }
 0x251   :  { %v513_v38 = vadd.f32 %v512_v26, %v498_v19  ;;  %v597_v0 = vsel %vm438_vm11, 1.0, %v663_v48  ;;  %v48_v26 = vld [vmem:[%s962_s1 + $0x78] sm:$0xff]  ;;  %vm443_vm0 = vcmp.ne.s32.totalorder %v427_v16, %v725_v42 }
 0x253   :  { %v337_v11 = vpop.f32.mrf.mxu1 }
 0x254   :  { %v373_v49 = vmul.f32 %v337_v11, %v700_v3  ;;  %v404_v11 = vmul.f32 %v388_v54, %v720_v31  ;;  %v424_v54 = vadd.s32 80, %v734_v25 }
 0x256   :  { %v389_v2 = vsub.f32 %v73_v47, %v373_v49  ;;  %v483_v27 = vmul.f32 %v404_v11, %v404_v11  ;;  %v79_v49 = vadd.f32 %v63_v34, %v45_v33  ;;  %vm440_vm13 = vcmp.ne.s32.totalorder %v424_v54, %v725_v42 }
 0x257   :  { %v81_v11 = vadd.f32 %v65_v62, %v47_v61  ;;  %v601_v34 = vsel %vm442_vm15, 1.0, %v663_v48 }
 0x258   :  { %v405_v20 = vmul.f32 %v389_v2, %v720_v31  ;;  %v499_v46 = vmul.f32 %v594_v18, %v483_v27  ;;  %v66_v27 = vld [vmem:[%s962_s1 + $0xf8] sm:$0xff] }
 0x25a   :  { %v484_v39 = vmul.f32 %v405_v20, %v405_v20  ;;  %v514_v63 = vadd.f32 %v513_v38, %v499_v46  ;;  %v429_v38 = vadd.s32 120, %v734_v25 }
 0x25b   :  { %v340_v44 = vpop.f32.mrf.mxu1 }
 0x25c   :  { %v374_v59 = vmul.f32 %v340_v44, %v700_v3  ;;  %v64_v44 = vld [vmem:[%s962_s1 + $0xe8] sm:$0xff]  ;;  %vm445_vm2 = vcmp.ne.s32.totalorder %v429_v38, %v725_v42 }
 0x25d   :  { %v80_v56 = vadd.f32 %v64_v44, %v46_v43  ;;  %v604_v54 = vsel %vm445_vm2, 1.0, %v663_v48 }
 0x25e   :  { %v390_v12 = vsub.f32 %v74_v58, %v374_v59  ;;  %v500_v58 = vmul.f32 %v595_v35, %v484_v39  ;;  %v82_v35 = vadd.f32 %v66_v27, %v48_v26  ;;  %v602_v39 = vsel %vm443_vm0, 1.0, %v663_v48 }
 0x260   :  { %v406_v21 = vmul.f32 %v390_v12, %v720_v31  ;;  %v515_v12 = vadd.f32 %v514_v63, %v500_v58 }
 0x262   :  { %v485_v52 = vmul.f32 %v406_v21, %v406_v21  ;;  %v600_v21 = vsel %vm441_vm14, 1.0, %v663_v48 }
 0x269   :  { %v761_v51 = vpop.f32.mrf.mxu2 }
 0x26a   :  { %v375_v6 = vmul.f32 %v761_v51, %v700_v3  ;;  %v61_v51 = vld [vmem:[%s962_s1 + $0xd0] sm:$0xff] }
 0x26b   :  { %v77_v28 = vadd.f32 %v61_v51, %v43_v15 }
 0x271   :  { %v790_v5 = vpop.f32.mrf.mxu2 }
 0x272   :  { %v376_v14 = vmul.f32 %v790_v5, %v700_v3  ;;  %v391_v5 = vsub.f32 %v75_v4, %v375_v6  ;;  %v501_v4 = vmul.f32 %v596_v40, %v485_v52  ;;  %v598_v6 = vsel %vm439_vm12, 1.0, %v663_v48 }
 0x274   :  { %v392_v30 = vsub.f32 %v76_v13, %v376_v14  ;;  %v407_v41 = vmul.f32 %v391_v5, %v720_v31  ;;  %v516_v19 = vadd.f32 %v515_v12, %v501_v4  ;;  %v599_v5 = vsel %vm440_vm13, 1.0, %v663_v48 }
 0x276   :  { %v408_v53 = vmul.f32 %v392_v30, %v720_v31  ;;  %v486_v59 = vmul.f32 %v407_v41, %v407_v41 }
 0x278   :  { %v502_v13 = vmul.f32 %v597_v0, %v486_v59 }
 0x279   :  { %v349_v37 = vpop.f32.mrf.mxu2 }
 0x27a   :  { %v377_v29 = vmul.f32 %v349_v37, %v700_v3 }
 0x27c   :  { %v393_v47 = vsub.f32 %v77_v28, %v377_v29  ;;  %v428_v28 = vadd.s32 112, %v734_v25  ;;  %v517_v29 = vadd.f32 %v516_v19, %v502_v13 }
 0x27e   :  { %v409_v1 = vmul.f32 %v393_v47, %v720_v31  ;;  %vm444_vm1 = vcmp.ne.s32.totalorder %v428_v28, %v725_v42 }
 0x27f   :  { %v603_v46 = vsel %vm444_vm1, 1.0, %v663_v48 }
 0x280   :  { %v488_v15 = vmul.f32 %v409_v1, %v409_v1 }
 0x281   :  { %v352_v24 = vpop.f32.mrf.mxu2 }
 0x282   :  { %v378_v37 = vmul.f32 %v352_v24, %v700_v3  ;;  %v504_v17 = vmul.f32 %v599_v5, %v488_v15 }
 0x284   :  { %v394_v55 = vsub.f32 %v78_v36, %v378_v37 }
 0x286   :  { %v410_v9 = vmul.f32 %v394_v55, %v720_v31 }
 0x288   :  { %v489_v22 = vmul.f32 %v410_v9, %v410_v9 }
 0x289   :  { %v355_v7 = vpop.f32.mrf.mxu3 }
 0x28a   :  { %v379_v50 = vmul.f32 %v355_v7, %v700_v3  ;;  %v487_v7 = vmul.f32 %v408_v53, %v408_v53  ;;  %v505_v36 = vmul.f32 %v600_v21, %v489_v22 }
 0x28c   :  { %v395_v2 = vsub.f32 %v79_v49, %v379_v50  ;;  %v503_v20 = vmul.f32 %v598_v6, %v487_v7 }
 0x28e   :  { %v411_v51 = vmul.f32 %v395_v2, %v720_v31  ;;  %v518_v33 = vadd.f32 %v517_v29, %v503_v20 }
 0x290   :  { %v490_v30 = vmul.f32 %v411_v51, %v411_v51  ;;  %v519_v41 = vadd.f32 %v518_v33, %v504_v17 }
 0x291   :  { %v358_v45 = vpop.f32.mrf.mxu3 }
 0x292   :  { %v380_v57 = vmul.f32 %v358_v45, %v700_v3  ;;  %v506_v43 = vmul.f32 %v601_v34, %v490_v30  ;;  %v520_v47 = vadd.f32 %v519_v41, %v505_v36 }
 0x294   :  { %v396_v10 = vsub.f32 %v80_v56, %v380_v57  ;;  %v521_v53 = vadd.f32 %v520_v47, %v506_v43 }
 0x296   :  { %v412_v23 = vmul.f32 %v396_v10, %v720_v31 }
 0x298   :  { %v491_v37 = vmul.f32 %v412_v23, %v412_v23 }
 0x299   :  { %v361_v14 = vpop.f32.mrf.mxu3 }
 0x29a   :  { %v381_v18 = vmul.f32 %v361_v14, %v700_v3  ;;  %v507_v49 = vmul.f32 %v602_v39, %v491_v37 }
 0x29c   :  { %v397_v24 = vsub.f32 %v81_v11, %v381_v18  ;;  %v522_v56 = vadd.f32 %v521_v53, %v507_v49 }
 0x29e   :  { %v413_v32 = vmul.f32 %v397_v24, %v720_v31 }
 0x2a0   :  { %v492_v44 = vmul.f32 %v413_v32, %v413_v32 }
 0x2a1   :  { %v364_v40 = vpop.f32.mrf.mxu3 }
 0x2a2   :  { %v382_v45 = vmul.f32 %v364_v40, %v700_v3  ;;  %v508_v25 = vmul.f32 %v603_v46, %v492_v44 }
 0x2a4   :  { %v398_v50 = vsub.f32 %v82_v35, %v382_v45  ;;  %v523_v3 = vadd.f32 %v522_v56, %v508_v25 }
 0x2a6   :  { %v414_v52 = vmul.f32 %v398_v50, %v720_v31 }
 0x2a8   :  { %v493_v55 = vmul.f32 %v414_v52, %v414_v52 }
 0x2aa   :  { %v509_v57 = vmul.f32 %v604_v54, %v493_v55 }
 0x2ac   :  { %v524_v58 = vadd.f32 %v523_v3, %v509_v57 }
 0x2ae   :  { %525 = vadd.xlane.f32.xlu1 %v524_v58 }
 0x321   :  { %v526_v59 = vpop.xlane.xlu1 %525 }
 0x322   :  { %v527_v60 = vrot.slane %v526_v59, 4 }
 0x324   :  { %v528_v61 = vadd.f32 %v527_v60, %v526_v59 }
 0x326   :  { %v529_v62 = vrot.slane %v528_v61, 2 }
 0x328   :  { %v530_v42 = vadd.f32 %v529_v62, %v528_v61 }
 0x32a   :  { %v531_v63 = vrot.slane %v530_v42, 1 }
 0x32c   :  { %v532_v31 = vadd.f32 %v531_v63, %v530_v42 }
 0x32e   :  { %618 = vpush %v532_v31 }
 0x35f   :  { %s619_s1 = spop %618 }
 0x360   :  { %s542_s3 = smul.f32 %s619_s1, %s739_s6 }
 0x362   :  { %s544_s24 = sadd.f32 %s543_s0, %s542_s3 }
 0x363   :  { %552 = sst [smem:[#allocation5 + $0x3]] %s542_s3 }
 0x364   :  { %546 = sst [smem:[#allocation5]] %s544_s24 }
 0x365   :  { %561 = dma.smem_to_vmem %s665_s25, 16, %s559_s23, [#allocation4]  }
 0x366   :  { %660 = dma.done.wait [#allocation4], 16  }
 0x367   :  { %661 = vsyncadd [#allocation4], 4294967280 }
 0x368   :  { %566 = sfence }
 0x369   :  { %567 = vsyncpa [#allocation3], 1 }
 0x36a   :  { %568 = vsyncpa [#allocation4], 1 }

</bundles_post_ra>
